<compile_context>
chip_gen: v6e
topology: v6e:2x2x1
jax: 0.10.0
libtpu: 0.0.40
codegen_flags: <defaults>
</compile_context>

<pallas_src>
import functools

import jax
import jax.numpy as jnp
from jax.experimental import pallas as pl
from jax.experimental.pallas import tpu as pltpu

BN_EPS = 1e-5     # nn.BatchNorm1d default eps
GLN_EPS = 1e-8    # global layer norm eps


# ----------------------------------------------------------------------------- in-kernel helpers
def _gln(x, gamma, beta):
    """Global layer norm over (C, T) of one sample; single-pass sum / sumsq statistics."""
    n = float(x.shape[0] * x.shape[1])
    s = jnp.sum(x)
    ssq = jnp.sum(x * x)
    mean = s / n
    var = jnp.maximum(ssq / n - mean * mean, 0.0)     # clamp for numerical safety
    return gamma * (x - mean) * jax.lax.rsqrt(var + GLN_EPS) + beta


# ----------------------------------------------------------------------------- kernels
def pointwise_conv_kernel(x_ref, w_ref, b_ref, o_ref, *, relu):
    """1x1 Conv1d (optionally + ReLU) on one (C, T_tile) block."""
    x = x_ref[0]                                                      # (Cin, Tt), act dtype
    w = w_ref[...].astype(x.dtype)                                    # feed MXU in act dtype
    y = jnp.dot(w, x, preferred_element_type=jnp.float32) + b_ref[...]
    if relu:
        y = jnp.maximum(y, 0.0)
    o_ref[0] = y.astype(o_ref.dtype)


def tcn_block_kernel(x_ref, bias1_ref, w1_ref, a1_ref, g1_ref, be1_ref,
                     wd_ref, bd_ref, a2_ref, g2_ref, be2_ref, w2_ref, b2_ref,
                     o_ref, *, kernel_size, dilation):
    """One TCN block: 1x1 conv (+speaker bias) -> PReLU -> gLN -> dilated depthwise conv
    -> PReLU -> gLN -> 1x1 conv -> residual add.  One grid step per batch element."""
    x_nat = x_ref[0]                                                  # (Cmid, T), act dtype
    x_f32 = x_nat.astype(jnp.float32)
    T = x_nat.shape[1]

    # 1x1 conv; bias1 already contains b1 + w1v @ v[b] (speaker fusion, no concat needed)
    w1 = w1_ref[...].astype(x_nat.dtype)
    h = jnp.dot(w1, x_nat, preferred_element_type=jnp.float32) + bias1_ref[0]   # (H, T) f32

    # PReLU (shared scalar from SMEM) + gLN
    a1 = a1_ref[0, 0]
    h = jnp.where(h >= 0, h, a1 * h)
    h = _gln(h, g1_ref[...], be1_ref[...])

    # dilated depthwise conv, 'same' padding (odd K): XLU roll + static lane mask per tap
    pad = dilation * (kernel_size - 1) // 2
    wd = wd_ref[...]                                                  # (H, K)
    t_idx = jax.lax.broadcasted_iota(jnp.int32, h.shape, 1)           # hoisted once
    acc = jnp.zeros_like(h)
    for k in range(kernel_size):
        s = k * dilation - pad                                        # static shift
        if s == 0:
            tap = h
        else:
            tap = pltpu.roll(h, (-s) % T, axis=1)                     # tap[t] = h[(t+s) % T]
            mask = (t_idx < T - s) if s > 0 else (t_idx >= -s)
            tap = jnp.where(mask, tap, 0.0)
        acc = acc + wd[:, k:k + 1] * tap
    h = acc + bd_ref[...]

    # PReLU + gLN
    a2 = a2_ref[0, 0]
    h = jnp.where(h >= 0, h, a2 * h)
    h = _gln(h, g2_ref[...], be2_ref[...])

    # 1x1 conv back to mid channels + residual (residual == block input; no second operand)
    y = jnp.dot(w2_ref[...], h, preferred_element_type=jnp.float32) + b2_ref[...]
    o_ref[0] = (x_f32 + y).astype(o_ref.dtype)


# ----------------------------------------------------------------------------- pallas_call wrappers
def run_pointwise(x, w, b, *, relu, out_dtype, t_tile=2048):
    """1x1 Conv1d (+optional ReLU) gridded over (batch, time tiles)."""
    B, Cin, T = x.shape
    Cout = w.shape[0]
    t_tile = min(t_tile, T)
    n_t = pl.cdiv(T, t_tile)
    kern = functools.partial(pointwise_conv_kernel, relu=relu)
    return pl.pallas_call(
        kern,
        out_shape=jax.ShapeDtypeStruct((B, Cout, T), out_dtype),
        grid=(B, n_t),
        in_specs=[
            pl.BlockSpec((1, Cin, t_tile), lambda bb, tt: (bb, 0, tt)),
            pl.BlockSpec(w.shape, lambda bb, tt: (0, 0)),
            pl.BlockSpec(b.shape, lambda bb, tt: (0, 0)),
        ],
        out_specs=pl.BlockSpec((1, Cout, t_tile), lambda bb, tt: (bb, 0, tt)),
        compiler_params=pltpu.CompilerParams(
            dimension_semantics=("parallel", "parallel")),
    )(x, w, b)


def run_tcn_block(x, bias1, p, *, dilation, kernel_size, out_dtype):
    """One TCN block over the batch grid.  x is both the matmul input and the residual."""
    B, Cmid, T = x.shape
    H = p["w1"].shape[0]
    kern = functools.partial(tcn_block_kernel, kernel_size=kernel_size, dilation=dilation)

    def full(arr):
        return pl.BlockSpec(arr.shape, lambda b, _nd=arr.ndim: (0,) * _nd)

    smem = pl.BlockSpec(memory_space=pltpu.MemorySpace.SMEM)          # PReLU scalars

    in_specs = [
        pl.BlockSpec((1, Cmid, T), lambda b: (b, 0, 0)),              # activation (x == res)
        pl.BlockSpec((1, H, 1), lambda b: (b, 0, 0)),                 # per-sample fused bias
        full(p["w1"]), smem, full(p["g1"]), full(p["be1"]),
        full(p["wd"]), full(p["bd"]), smem, full(p["g2"]), full(p["be2"]),
        full(p["w2"]), full(p["b2"]),
    ]
    # TODO(synk): for realistic T, add a T-tile 'arbitrary' axis with a two-pass gLN and set
    #             pltpu.CompilerParams(vmem_limit_bytes=...) per generation (v7x 64 MiB).
    return pl.pallas_call(
        kern,
        out_shape=jax.ShapeDtypeStruct((B, Cmid, T), out_dtype),
        grid=(B,),
        in_specs=in_specs,
        out_specs=pl.BlockSpec((1, Cmid, T), lambda b: (b, 0, 0)),
        compiler_params=pltpu.CompilerParams(dimension_semantics=("parallel",)),
    )(x, bias1, p["w1"], p["a1"], p["g1"], p["be1"],
      p["wd"], p["bd"], p["a2"], p["g2"], p["be2"], p["w2"], p["b2"])


def run_masks(y, mask_w, mask_b):
    """All M mask heads fused into one (M*out_ch, mid) matmul; split back in the wrapper."""
    M, Cout, Cmid = mask_w.shape
    B, _, T = y.shape
    w = mask_w.reshape(M * Cout, Cmid)
    b = mask_b.reshape(M * Cout, 1)
    out = run_pointwise(y, w, b, relu=True, out_dtype=jnp.float32)    # (B, M*Cout, T)
    out = out.reshape(B, M, Cout, T)
    return [out[:, i] for i in range(M)]


# ----------------------------------------------------------------------------- forward
def speaker_extractor_forward(params, y, v, *, kernel_size, act_dtype=jnp.float32):
    """Mirrors SpeakerExtractor.forward: prolog -> stacked TCNs (speaker-fused) -> mask list.

    act_dtype controls the dtype of inter-block activations written to HBM (bfloat16 halves
    HBM traffic on v6e/v7x); all in-kernel statistics and accumulation stay in float32.
    """
    B = y.shape[0]

    # --- prolog: fold BatchNorm1d (training batch statistics) into the 1x1 conv ------------
    pp = params["prolog"]
    mean = jnp.mean(y, axis=(0, 2))                                   # (Cin,)
    var = jnp.mean(jnp.square(y - mean[None, :, None]), axis=(0, 2))  # biased, as BN uses
    scale = pp["bn_g"] * jax.lax.rsqrt(var + BN_EPS)                  # (Cin,)
    shift = pp["bn_b"] - mean * scale                                 # (Cin,)
    w_eff = pp["w"] * scale[None, :]                                  # (Cmid, Cin)
    b_eff = pp["b"] + jnp.dot(pp["w"], shift[:, None])                # (Cmid, 1)
    y = run_pointwise(y, w_eff, b_eff, relu=False, out_dtype=act_dtype)

    # --- TCN stacks --------------------------------------------------------------------------
    # TODO(synk): pairs of adjacent blocks could be fused into one pallas_call (y kept in VMEM)
    #             once T is tiled; gated on the per-generation VMEM budget.
    for blocks in params["tcn"]:
        for bi, p in enumerate(blocks):
            if bi == 0:
                # speaker fusion folded to a rank-1 per-sample bias: b1 + w1v @ v[b]
                spk = jnp.dot(v, p["w1v"].T)                          # (B, H)
                bias1 = p["b1"][None] + spk[:, :, None]               # (B, H, 1)
            else:
                bias1 = jnp.broadcast_to(p["b1"][None], (B,) + p["b1"].shape)
            y = run_tcn_block(y, bias1, p, dilation=2 ** bi,
                              kernel_size=kernel_size, out_dtype=act_dtype)

    # --- mask heads --------------------------------------------------------------------------
    return run_masks(y, params["mask_w"], params["mask_b"])


# ----------------------------------------------------------------------------- deterministic params
def init_params(key, in_ch, mid_ch, out_ch, spk_dim, num_stack, mask_num,
                num_blocks, conv_ch, ksz):
    keys = iter(jax.random.split(key, 512))
    nrm = lambda shape, scale=0.1: scale * jax.random.normal(next(keys), shape, jnp.float32)
    params = {
        "prolog": dict(
            bn_g=1.0 + nrm((in_ch,)),
            bn_b=nrm((in_ch,)),
            w=nrm((mid_ch, in_ch)),
            b=nrm((mid_ch, 1)),
        )
    }
    stacks = []
    for _ in range(num_stack):
        blocks = []
        for bi in range(num_blocks):
            blk = dict(
                w1=nrm((conv_ch, mid_ch)), b1=nrm((conv_ch, 1)),
                a1=jnp.full((1, 1), 0.25, jnp.float32),
                g1=1.0 + nrm((conv_ch, 1)), be1=nrm((conv_ch, 1)),
                wd=nrm((conv_ch, ksz)), bd=nrm((conv_ch, 1)),
                a2=jnp.full((1, 1), 0.25, jnp.float32),
                g2=1.0 + nrm((conv_ch, 1)), be2=nrm((conv_ch, 1)),
                w2=nrm((mid_ch, conv_ch)), b2=nrm((mid_ch, 1)),
            )
            if bi == 0:
                blk["w1v"] = nrm((conv_ch, spk_dim))      # speaker half of the original w1
            blocks.append(blk)
        stacks.append(blocks)
    params["tcn"] = stacks
    params["mask_w"] = nrm((mask_num, out_ch, mid_ch))
    params["mask_b"] = nrm((mask_num, out_ch, 1))
    return params


# ----------------------------------------------------------------------------- main
if __name__ == "__main__":
    B, in_ch, mid_ch, out_ch, spk_dim = 2, 4, 8, 4, 6
    num_stack, mask_num = 2, 3
    T = 128                                    # keep T a multiple of 128 (lane-dense stores)
    tcn_params = dict(num_blocks=2, conv_channels=16, kernel_size=3)

    key = jax.random.PRNGKey(0)
    kp, ky, kv = jax.random.split(key, 3)
    params = init_params(kp, in_ch, mid_ch, out_ch, spk_dim, num_stack, mask_num,
                         tcn_params["num_blocks"], tcn_params["conv_channels"],
                         tcn_params["kernel_size"])

    y = jax.random.normal(ky, (B, in_ch, T), jnp.float32)    # mixed-speech encoder features
    v = jax.random.normal(kv, (B, spk_dim), jnp.float32)     # speaker embedding

    # float32 activations: exact module semantics
    fwd_f32 = jax.jit(functools.partial(speaker_extractor_forward,
                                        kernel_size=tcn_params["kernel_size"],
                                        act_dtype=jnp.float32))
    masks = jax.block_until_ready(fwd_f32(params, y, v))

    assert len(masks) == mask_num
    assert all(m.shape == (B, out_ch, T) and m.dtype == jnp.float32 for m in masks)
    assert all(bool(jnp.all(m >= 0.0)) for m in masks)       # ReLU output

    # bfloat16 inter-block activations (review item for v6e/v7x): exercise that path too
    fwd_bf16 = jax.jit(functools.partial(speaker_extractor_forward,
                                         kernel_size=tcn_params["kernel_size"],
                                         act_dtype=jnp.bfloat16))
    masks_bf16 = jax.block_until_ready(fwd_bf16(params, y, v))
    assert all(m.shape == (B, out_ch, T) and bool(jnp.all(m >= 0.0)) for m in masks_bf16)

    print("KERNEL_OK")
</pallas_src>

<mosaic_0001>
module attributes {stable_mosaic.version = 11 : i64} {
  func.func @pointwise_conv_kernel(%arg0: i32, %arg1: i32, %arg2: memref<1x4x128xf32, #tpu.memory_space<vmem>>, %arg3: memref<8x4xf32, #tpu.memory_space<vmem>>, %arg4: memref<8x1xf32, #tpu.memory_space<vmem>>, %arg5: memref<1x8x128xf32, #tpu.memory_space<vmem>>) attributes {dimension_semantics = [#tpu.dimension_semantics<parallel>, #tpu.dimension_semantics<parallel>], iteration_bounds = array<i64: 2, 1>, scalar_prefetch = 0 : i64, scratch_operands = 0 : i64, tpu.core_type = #tpu.core_type<tc>, window_params = [{transform_indices = @transform_0, window_bounds = array<i64: 1, 4, 128>}, {pipeline_mode = #tpu.pipeline_mode<synchronous>, transform_indices = @transform_1, window_bounds = array<i64: 8, 4>}, {pipeline_mode = #tpu.pipeline_mode<synchronous>, transform_indices = @transform_2, window_bounds = array<i64: 8, 1>}, {transform_indices = @transform_3, window_bounds = array<i64: 1, 8, 128>}]} {
    %c0 = arith.constant 0 : index
    %c0_0 = arith.constant 0 : index
    %c0_1 = arith.constant 0 : index
    %0 = vector.load %arg2[%c0, %c0_0, %c0_1] : memref<1x4x128xf32, #tpu.memory_space<vmem>>, vector<1x4x128xf32>
    %1 = vector.shape_cast %0 : vector<1x4x128xf32> to vector<4x128xf32>
    %c0_2 = arith.constant 0 : index
    %c0_3 = arith.constant 0 : index
    %2 = vector.load %arg3[%c0_2, %c0_3] : memref<8x4xf32, #tpu.memory_space<vmem>>, vector<8x4xf32>
    %cst = arith.constant dense<0.000000e+00> : vector<8x128xf32>
    %3 = tpu.matmul %2, %1, %cst {dimension_numbers = #tpu.dot_dimension_numbers<[1], [0], [0], [1], [0, 0, 1, 1], [], []>} : vector<8x4xf32>, vector<4x128xf32>, vector<8x128xf32> -> vector<8x128xf32>
    %c0_4 = arith.constant 0 : index
    %c0_5 = arith.constant 0 : index
    %4 = vector.load %arg4[%c0_4, %c0_5] : memref<8x1xf32, #tpu.memory_space<vmem>>, vector<8x1xf32>
    %5 = vector.broadcast %4 : vector<8x1xf32> to vector<8x128xf32>
    %6 = arith.addf %3, %5 : vector<8x128xf32>
    %c0_6 = arith.constant 0 : index
    %c0_7 = arith.constant 0 : index
    %c0_8 = arith.constant 0 : index
    %7 = vector.load %arg5[%c0_6, %c0_7, %c0_8] : memref<1x8x128xf32, #tpu.memory_space<vmem>>, vector<1x8x128xf32>
    %8 = vector.shape_cast %7 : vector<1x8x128xf32> to vector<8x128xf32>
    %9 = vector.shape_cast %6 : vector<8x128xf32> to vector<1x8x128xf32>
    tpu.vector_store %arg5[%c0_6, %c0_7, %c0_8], %9 {strides = array<i32>} : memref<1x8x128xf32, #tpu.memory_space<vmem>>, vector<1x8x128xf32>,
    return
  }
  func.func @transform_0(%arg0: i32, %arg1: i32) -> (i32, i32, i32) {
    %c0_i32 = arith.constant 0 : i32
    %c0_i32_0 = arith.constant 0 : i32
    return %arg0, %c0_i32, %arg1 : i32, i32, i32
  }
  func.func @transform_1(%arg0: i32, %arg1: i32) -> (i32, i32) {
    %c0_i32 = arith.constant 0 : i32
    %c0_i32_0 = arith.constant 0 : i32
    %c0_i32_1 = arith.constant 0 : i32
    return %c0_i32, %c0_i32_0 : i32, i32
  }
  func.func @transform_2(%arg0: i32, %arg1: i32) -> (i32, i32) {
    %c0_i32 = arith.constant 0 : i32
    %c0_i32_0 = arith.constant 0 : i32
    %c0_i32_1 = arith.constant 0 : i32
    return %c0_i32, %c0_i32_0 : i32, i32
  }
  func.func @transform_3(%arg0: i32, %arg1: i32) -> (i32, i32, i32) {
    %c0_i32 = arith.constant 0 : i32
    %c0_i32_0 = arith.constant 0 : i32
    return %arg0, %c0_i32, %arg1 : i32, i32, i32
  }
}

module attributes {stable_mosaic.version = 11 : i64} {
  func.func @tcn_block_kernel(%arg0: i32, %arg1: memref<1x8x128xf32, #tpu.memory_space<vmem>>, %arg2: memref<1x16x1xf32, #tpu.memory_space<vmem>>, %arg3: memref<16x8xf32, #tpu.memory_space<vmem>>, %arg4: memref<1x1xf32, #tpu.memory_space<smem>>, %arg5: memref<16x1xf32, #tpu.memory_space<vmem>>, %arg6: memref<16x1xf32, #tpu.memory_space<vmem>>, %arg7: memref<16x3xf32, #tpu.memory_space<vmem>>, %arg8: memref<16x1xf32, #tpu.memory_space<vmem>>, %arg9: memref<1x1xf32, #tpu.memory_space<smem>>, %arg10: memref<16x1xf32, #tpu.memory_space<vmem>>, %arg11: memref<16x1xf32, #tpu.memory_space<vmem>>, %arg12: memref<8x16xf32, #tpu.memory_space<vmem>>, %arg13: memref<8x1xf32, #tpu.memory_space<vmem>>, %arg14: memref<1x8x128xf32, #tpu.memory_space<vmem>>) attributes {dimension_semantics = [#tpu.dimension_semantics<parallel>], iteration_bounds = array<i64: 2>, scalar_prefetch = 0 : i64, scratch_operands = 0 : i64, tpu.core_type = #tpu.core_type<tc>, window_params = [{transform_indices = @transform_0, window_bounds = array<i64: 1, 8, 128>}, {transform_indices = @transform_1, window_bounds = array<i64: 1, 16, 1>}, {pipeline_mode = #tpu.pipeline_mode<synchronous>, transform_indices = @transform_2, window_bounds = array<i64: 16, 8>}, {transform_indices = @transform_3, window_bounds = array<i64: 1, 1>}, {pipeline_mode = #tpu.pipeline_mode<synchronous>, transform_indices = @transform_4, window_bounds = array<i64: 16, 1>}, {pipeline_mode = #tpu.pipeline_mode<synchronous>, transform_indices = @transform_5, window_bounds = array<i64: 16, 1>}, {pipeline_mode = #tpu.pipeline_mode<synchronous>, transform_indices = @transform_6, window_bounds = array<i64: 16, 3>}, {pipeline_mode = #tpu.pipeline_mode<synchronous>, transform_indices = @transform_7, window_bounds = array<i64: 16, 1>}, {transform_indices = @transform_8, window_bounds = array<i64: 1, 1>}, {pipeline_mode = #tpu.pipeline_mode<synchronous>, transform_indices = @transform_9, window_bounds = array<i64: 16, 1>}, {pipeline_mode = #tpu.pipeline_mode<synchronous>, transform_indices = @transform_10, window_bounds = array<i64: 16, 1>}, {pipeline_mode = #tpu.pipeline_mode<synchronous>, transform_indices = @transform_11, window_bounds = array<i64: 8, 16>}, {pipeline_mode = #tpu.pipeline_mode<synchronous>, transform_indices = @transform_12, window_bounds = array<i64: 8, 1>}, {transform_indices = @transform_13, window_bounds = array<i64: 1, 8, 128>}]} {
    %c0 = arith.constant 0 : index
    %c0_0 = arith.constant 0 : index
    %c0_1 = arith.constant 0 : index
    %0 = vector.load %arg1[%c0, %c0_0, %c0_1] : memref<1x8x128xf32, #tpu.memory_space<vmem>>, vector<1x8x128xf32>
    %1 = vector.shape_cast %0 : vector<1x8x128xf32> to vector<8x128xf32>
    %c0_2 = arith.constant 0 : index
    %c0_3 = arith.constant 0 : index
    %2 = vector.load %arg3[%c0_2, %c0_3] : memref<16x8xf32, #tpu.memory_space<vmem>>, vector<16x8xf32>
    %cst = arith.constant dense<0.000000e+00> : vector<16x128xf32>
    %3 = tpu.matmul %2, %1, %cst {dimension_numbers = #tpu.dot_dimension_numbers<[1], [0], [0], [1], [0, 0, 1, 1], [], []>} : vector<16x8xf32>, vector<8x128xf32>, vector<16x128xf32> -> vector<16x128xf32>
    %c0_4 = arith.constant 0 : index
    %c0_5 = arith.constant 0 : index
    %c0_6 = arith.constant 0 : index
    %4 = vector.load %arg2[%c0_4, %c0_5, %c0_6] : memref<1x16x1xf32, #tpu.memory_space<vmem>>, vector<1x16x1xf32>
    %5 = vector.shape_cast %4 : vector<1x16x1xf32> to vector<16x1xf32>
    %6 = vector.broadcast %5 : vector<16x1xf32> to vector<16x128xf32>
    %7 = arith.addf %3, %6 : vector<16x128xf32>
    %c0_7 = arith.constant 0 : index
    %c0_8 = arith.constant 0 : index
    %8 = memref.load %arg4[%c0_7, %c0_8] : memref<1x1xf32, #tpu.memory_space<smem>>
    %cst_9 = arith.constant 0.000000e+00 : f32
    %9 = vector.broadcast %cst_9 : f32 to vector<16x128xf32>
    %10 = arith.cmpf oge, %7, %9 : vector<16x128xf32>
    %11 = vector.broadcast %8 : f32 to vector<16x128xf32>
    %12 = arith.mulf %11, %7 : vector<16x128xf32>
    %13 = arith.select %10, %7, %12 : vector<16x128xi1>, vector<16x128xf32>
    %c0_10 = arith.constant 0 : index
    %c0_11 = arith.constant 0 : index
    %14 = vector.load %arg5[%c0_10, %c0_11] : memref<16x1xf32, #tpu.memory_space<vmem>>, vector<16x1xf32>
    %c0_12 = arith.constant 0 : index
    %c0_13 = arith.constant 0 : index
    %15 = vector.load %arg6[%c0_12, %c0_13] : memref<16x1xf32, #tpu.memory_space<vmem>>, vector<16x1xf32>
    %16 = vector.shape_cast %13 : vector<16x128xf32> to vector<1x16x128xf32>
    %cst_14 = arith.constant dense<0.000000e+00> : vector<1xf32>
    %17 = vector.multi_reduction <add>, %16, %cst_14 [1, 2] : vector<1x16x128xf32> to vector<1xf32>
    %18 = vector.shape_cast %17 : vector<1xf32> to vector<1x1x1xf32>
    %19 = vector.extract %18[0, 0, 0] : f32 from vector<1x1x1xf32>
    %20 = arith.mulf %13, %13 : vector<16x128xf32>
    %21 = vector.shape_cast %20 : vector<16x128xf32> to vector<1x16x128xf32>
    %cst_15 = arith.constant dense<0.000000e+00> : vector<1xf32>
    %22 = vector.multi_reduction <add>, %21, %cst_15 [1, 2] : vector<1x16x128xf32> to vector<1xf32>
    %23 = vector.shape_cast %22 : vector<1xf32> to vector<1x1x1xf32>
    %24 = vector.extract %23[0, 0, 0] : f32 from vector<1x1x1xf32>
    %cst_16 = arith.constant 2.048000e+03 : f32
    %25 = arith.divf %19, %cst_16 : f32
    %cst_17 = arith.constant 2.048000e+03 : f32
    %26 = arith.divf %24, %cst_17 : f32
    %27 = arith.mulf %25, %25 : f32
    %28 = arith.subf %26, %27 : f32
    %cst_18 = arith.constant 0.000000e+00 : f32
    %29 = arith.maximumf %28, %cst_18 : f32
    %30 = vector.broadcast %25 : f32 to vector<16x128xf32>
    %31 = arith.subf %13, %30 : vector<16x128xf32>
    %32 = vector.broadcast %14 : vector<16x1xf32> to vector<16x128xf32>
    %33 = arith.mulf %32, %31 : vector<16x128xf32>
    %cst_19 = arith.constant 9.99999993E-9 : f32
    %34 = arith.addf %29, %cst_19 : f32
    %35 = math.rsqrt %34 : f32
    %36 = vector.broadcast %35 : f32 to vector<16x128xf32>
    %37 = arith.mulf %33, %36 : vector<16x128xf32>
    %38 = vector.broadcast %15 : vector<16x1xf32> to vector<16x128xf32>
    %39 = arith.addf %37, %38 : vector<16x128xf32>
    %c0_20 = arith.constant 0 : index
    %c0_21 = arith.constant 0 : index
    %40 = vector.load %arg7[%c0_20, %c0_21] : memref<16x3xf32, #tpu.memory_space<vmem>>, vector<16x3xf32>
    %41 = tpu.iota {dimensions = array<i32: 1>} : vector<16x128xi32>
    %cst_22 = arith.constant 0.000000e+00 : f32
    %42 = vector.broadcast %cst_22 : f32 to vector<16x128xf32>
    %c1_i32 = arith.constant 1 : i32
    %43 = tpu.dynamic_rotate %39 by %c1_i32 dim 1 : vector<16x128xf32>, i32 -> vector<16x128xf32>
    %c1_i32_23 = arith.constant 1 : i32
    %44 = vector.broadcast %c1_i32_23 : i32 to vector<16x128xi32>
    %45 = arith.cmpi sge, %41, %44 : vector<16x128xi32>
    %cst_24 = arith.constant 0.000000e+00 : f32
    %46 = vector.broadcast %cst_24 : f32 to vector<16x128xf32>
    %47 = arith.select %45, %43, %46 : vector<16x128xi1>, vector<16x128xf32>
    %48 = vector.extract_strided_slice %40 {offsets = [0, 0], sizes = [16, 1], strides = [1, 1]} : vector<16x3xf32> to vector<16x1xf32>
    %49 = vector.broadcast %48 : vector<16x1xf32> to vector<16x128xf32>
    %50 = arith.mulf %49, %47 : vector<16x128xf32>
    %51 = arith.addf %42, %50 : vector<16x128xf32>
    %52 = vector.extract_strided_slice %40 {offsets = [0, 1], sizes = [16, 1], strides = [1, 1]} : vector<16x3xf32> to vector<16x1xf32>
    %53 = vector.broadcast %52 : vector<16x1xf32> to vector<16x128xf32>
    %54 = arith.mulf %53, %39 : vector<16x128xf32>
    %55 = arith.addf %51, %54 : vector<16x128xf32>
    %c127_i32 = arith.constant 127 : i32
    %56 = tpu.dynamic_rotate %39 by %c127_i32 dim 1 : vector<16x128xf32>, i32 -> vector<16x128xf32>
    %c127_i32_25 = arith.constant 127 : i32
    %57 = vector.broadcast %c127_i32_25 : i32 to vector<16x128xi32>
    %58 = arith.cmpi slt, %41, %57 : vector<16x128xi32>
    %cst_26 = arith.constant 0.000000e+00 : f32
    %59 = vector.broadcast %cst_26 : f32 to vector<16x128xf32>
    %60 = arith.select %58, %56, %59 : vector<16x128xi1>, vector<16x128xf32>
    %61 = vector.extract_strided_slice %40 {offsets = [0, 2], sizes = [16, 1], strides = [1, 1]} : vector<16x3xf32> to vector<16x1xf32>
    %62 = vector.broadcast %61 : vector<16x1xf32> to vector<16x128xf32>
    %63 = arith.mulf %62, %60 : vector<16x128xf32>
    %64 = arith.addf %55, %63 : vector<16x128xf32>
    %c0_27 = arith.constant 0 : index
    %c0_28 = arith.constant 0 : index
    %65 = vector.load %arg8[%c0_27, %c0_28] : memref<16x1xf32, #tpu.memory_space<vmem>>, vector<16x1xf32>
    %66 = vector.broadcast %65 : vector<16x1xf32> to vector<16x128xf32>
    %67 = arith.addf %64, %66 : vector<16x128xf32>
    %c0_29 = arith.constant 0 : index
    %c0_30 = arith.constant 0 : index
    %68 = memref.load %arg9[%c0_29, %c0_30] : memref<1x1xf32, #tpu.memory_space<smem>>
    %cst_31 = arith.constant 0.000000e+00 : f32
    %69 = vector.broadcast %cst_31 : f32 to vector<16x128xf32>
    %70 = arith.cmpf oge, %67, %69 : vector<16x128xf32>
    %71 = vector.broadcast %68 : f32 to vector<16x128xf32>
    %72 = arith.mulf %71, %67 : vector<16x128xf32>
    %73 = arith.select %70, %67, %72 : vector<16x128xi1>, vector<16x128xf32>
    %c0_32 = arith.constant 0 : index
    %c0_33 = arith.constant 0 : index
    %74 = vector.load %arg10[%c0_32, %c0_33] : memref<16x1xf32, #tpu.memory_space<vmem>>, vector<16x1xf32>
    %c0_34 = arith.constant 0 : index
    %c0_35 = arith.constant 0 : index
    %75 = vector.load %arg11[%c0_34, %c0_35] : memref<16x1xf32, #tpu.memory_space<vmem>>, vector<16x1xf32>
    %76 = vector.shape_cast %73 : vector<16x128xf32> to vector<1x16x128xf32>
    %cst_36 = arith.constant dense<0.000000e+00> : vector<1xf32>
    %77 = vector.multi_reduction <add>, %76, %cst_36 [1, 2] : vector<1x16x128xf32> to vector<1xf32>
    %78 = vector.shape_cast %77 : vector<1xf32> to vector<1x1x1xf32>
    %79 = vector.extract %78[0, 0, 0] : f32 from vector<1x1x1xf32>
    %80 = arith.mulf %73, %73 : vector<16x128xf32>
    %81 = vector.shape_cast %80 : vector<16x128xf32> to vector<1x16x128xf32>
    %cst_37 = arith.constant dense<0.000000e+00> : vector<1xf32>
    %82 = vector.multi_reduction <add>, %81, %cst_37 [1, 2] : vector<1x16x128xf32> to vector<1xf32>
    %83 = vector.shape_cast %82 : vector<1xf32> to vector<1x1x1xf32>
    %84 = vector.extract %83[0, 0, 0] : f32 from vector<1x1x1xf32>
    %cst_38 = arith.constant 2.048000e+03 : f32
    %85 = arith.divf %79, %cst_38 : f32
    %cst_39 = arith.constant 2.048000e+03 : f32
    %86 = arith.divf %84, %cst_39 : f32
    %87 = arith.mulf %85, %85 : f32
    %88 = arith.subf %86, %87 : f32
    %cst_40 = arith.constant 0.000000e+00 : f32
    %89 = arith.maximumf %88, %cst_40 : f32
    %90 = vector.broadcast %85 : f32 to vector<16x128xf32>
    %91 = arith.subf %73, %90 : vector<16x128xf32>
    %92 = vector.broadcast %74 : vector<16x1xf32> to vector<16x128xf32>
    %93 = arith.mulf %92, %91 : vector<16x128xf32>
    %cst_41 = arith.constant 9.99999993E-9 : f32
    %94 = arith.addf %89, %cst_41 : f32
    %95 = math.rsqrt %94 : f32
    %96 = vector.broadcast %95 : f32 to vector<16x128xf32>
    %97 = arith.mulf %93, %96 : vector<16x128xf32>
    %98 = vector.broadcast %75 : vector<16x1xf32> to vector<16x128xf32>
    %99 = arith.addf %97, %98 : vector<16x128xf32>
    %c0_42 = arith.constant 0 : index
    %c0_43 = arith.constant 0 : index
    %100 = vector.load %arg12[%c0_42, %c0_43] : memref<8x16xf32, #tpu.memory_space<vmem>>, vector<8x16xf32>
    %cst_44 = arith.constant dense<0.000000e+00> : vector<8x128xf32>
    %101 = tpu.matmul %100, %99, %cst_44 {dimension_numbers = #tpu.dot_dimension_numbers<[1], [0], [0], [1], [0, 0, 1, 1], [], []>} : vector<8x16xf32>, vector<16x128xf32>, vector<8x128xf32> -> vector<8x128xf32>
    %c0_45 = arith.constant 0 : index
    %c0_46 = arith.constant 0 : index
    %102 = vector.load %arg13[%c0_45, %c0_46] : memref<8x1xf32, #tpu.memory_space<vmem>>, vector<8x1xf32>
    %103 = vector.broadcast %102 : vector<8x1xf32> to vector<8x128xf32>
    %104 = arith.addf %101, %103 : vector<8x128xf32>
    %105 = arith.addf %1, %104 : vector<8x128xf32>
    %c0_47 = arith.constant 0 : index
    %c0_48 = arith.constant 0 : index
    %c0_49 = arith.constant 0 : index
    %106 = vector.load %arg14[%c0_47, %c0_48, %c0_49] : memref<1x8x128xf32, #tpu.memory_space<vmem>>, vector<1x8x128xf32>
    %107 = vector.shape_cast %106 : vector<1x8x128xf32> to vector<8x128xf32>
    %108 = vector.shape_cast %105 : vector<8x128xf32> to vector<1x8x128xf32>
    tpu.vector_store %arg14[%c0_47, %c0_48, %c0_49], %108 {strides = array<i32>} : memref<1x8x128xf32, #tpu.memory_space<vmem>>, vector<1x8x128xf32>,
    return
  }
  func.func @transform_0(%arg0: i32) -> (i32, i32, i32) {
    %c0_i32 = arith.constant 0 : i32
    %c0_i32_0 = arith.constant 0 : i32
    %c0_i32_1 = arith.constant 0 : i32
    return %arg0, %c0_i32, %c0_i32_0 : i32, i32, i32
  }
  func.func @transform_1(%arg0: i32) -> (i32, i32, i32) {
    %c0_i32 = arith.constant 0 : i32
    %c0_i32_0 = arith.constant 0 : i32
    %c0_i32_1 = arith.constant 0 : i32
    return %arg0, %c0_i32, %c0_i32_0 : i32, i32, i32
  }
  func.func @transform_2(%arg0: i32) -> (i32, i32) {
    %c0_i32 = arith.constant 0 : i32
    %c0_i32_0 = arith.constant 0 : i32
    %c0_i32_1 = arith.constant 0 : i32
    return %c0_i32, %c0_i32_0 : i32, i32
  }
  func.func @transform_3(%arg0: i32) -> (i32, i32) {
    %c0_i32 = arith.constant 0 : i32
    %c0_i32_0 = arith.constant 0 : i32
    %c0_i32_1 = arith.constant 0 : i32
    return %c0_i32, %c0_i32_0 : i32, i32
  }
  func.func @transform_4(%arg0: i32) -> (i32, i32) {
    %c0_i32 = arith.constant 0 : i32
    %c0_i32_0 = arith.constant 0 : i32
    %c0_i32_1 = arith.constant 0 : i32
    return %c0_i32, %c0_i32_0 : i32, i32
  }
  func.func @transform_5(%arg0: i32) -> (i32, i32) {
    %c0_i32 = arith.constant 0 : i32
    %c0_i32_0 = arith.constant 0 : i32
    %c0_i32_1 = arith.constant 0 : i32
    return %c0_i32, %c0_i32_0 : i32, i32
  }
  func.func @transform_6(%arg0: i32) -> (i32, i32) {
    %c0_i32 = arith.constant 0 : i32
    %c0_i32_0 = arith.constant 0 : i32
    %c0_i32_1 = arith.constant 0 : i32
    return %c0_i32, %c0_i32_0 : i32, i32
  }
  func.func @transform_7(%arg0: i32) -> (i32, i32) {
    %c0_i32 = arith.constant 0 : i32
    %c0_i32_0 = arith.constant 0 : i32
    %c0_i32_1 = arith.constant 0 : i32
    return %c0_i32, %c0_i32_0 : i32, i32
  }
  func.func @transform_8(%arg0: i32) -> (i32, i32) {
    %c0_i32 = arith.constant 0 : i32
    %c0_i32_0 = arith.constant 0 : i32
    %c0_i32_1 = arith.constant 0 : i32
    return %c0_i32, %c0_i32_0 : i32, i32
  }
  func.func @transform_9(%arg0: i32) -> (i32, i32) {
    %c0_i32 = arith.constant 0 : i32
    %c0_i32_0 = arith.constant 0 : i32
    %c0_i32_1 = arith.constant 0 : i32
    return %c0_i32, %c0_i32_0 : i32, i32
  }
  func.func @transform_10(%arg0: i32) -> (i32, i32) {
    %c0_i32 = arith.constant 0 : i32
    %c0_i32_0 = arith.constant 0 : i32
    %c0_i32_1 = arith.constant 0 : i32
    return %c0_i32, %c0_i32_0 : i32, i32
  }
  func.func @transform_11(%arg0: i32) -> (i32, i32) {
    %c0_i32 = arith.constant 0 : i32
    %c0_i32_0 = arith.constant 0 : i32
    %c0_i32_1 = arith.constant 0 : i32
    return %c0_i32, %c0_i32_0 : i32, i32
  }
  func.func @transform_12(%arg0: i32) -> (i32, i32) {
    %c0_i32 = arith.constant 0 : i32
    %c0_i32_0 = arith.constant 0 : i32
    %c0_i32_1 = arith.constant 0 : i32
    return %c0_i32, %c0_i32_0 : i32, i32
  }
  func.func @transform_13(%arg0: i32) -> (i32, i32, i32) {
    %c0_i32 = arith.constant 0 : i32
    %c0_i32_0 = arith.constant 0 : i32
    %c0_i32_1 = arith.constant 0 : i32
    return %arg0, %c0_i32, %c0_i32_0 : i32, i32, i32
  }
}

module attributes {stable_mosaic.version = 11 : i64} {
  func.func @tcn_block_kernel(%arg0: i32, %arg1: memref<1x8x128xf32, #tpu.memory_space<vmem>>, %arg2: memref<1x16x1xf32, #tpu.memory_space<vmem>>, %arg3: memref<16x8xf32, #tpu.memory_space<vmem>>, %arg4: memref<1x1xf32, #tpu.memory_space<smem>>, %arg5: memref<16x1xf32, #tpu.memory_space<vmem>>, %arg6: memref<16x1xf32, #tpu.memory_space<vmem>>, %arg7: memref<16x3xf32, #tpu.memory_space<vmem>>, %arg8: memref<16x1xf32, #tpu.memory_space<vmem>>, %arg9: memref<1x1xf32, #tpu.memory_space<smem>>, %arg10: memref<16x1xf32, #tpu.memory_space<vmem>>, %arg11: memref<16x1xf32, #tpu.memory_space<vmem>>, %arg12: memref<8x16xf32, #tpu.memory_space<vmem>>, %arg13: memref<8x1xf32, #tpu.memory_space<vmem>>, %arg14: memref<1x8x128xf32, #tpu.memory_space<vmem>>) attributes {dimension_semantics = [#tpu.dimension_semantics<parallel>], iteration_bounds = array<i64: 2>, scalar_prefetch = 0 : i64, scratch_operands = 0 : i64, tpu.core_type = #tpu.core_type<tc>, window_params = [{transform_indices = @transform_0, window_bounds = array<i64: 1, 8, 128>}, {transform_indices = @transform_1, window_bounds = array<i64: 1, 16, 1>}, {pipeline_mode = #tpu.pipeline_mode<synchronous>, transform_indices = @transform_2, window_bounds = array<i64: 16, 8>}, {transform_indices = @transform_3, window_bounds = array<i64: 1, 1>}, {pipeline_mode = #tpu.pipeline_mode<synchronous>, transform_indices = @transform_4, window_bounds = array<i64: 16, 1>}, {pipeline_mode = #tpu.pipeline_mode<synchronous>, transform_indices = @transform_5, window_bounds = array<i64: 16, 1>}, {pipeline_mode = #tpu.pipeline_mode<synchronous>, transform_indices = @transform_6, window_bounds = array<i64: 16, 3>}, {pipeline_mode = #tpu.pipeline_mode<synchronous>, transform_indices = @transform_7, window_bounds = array<i64: 16, 1>}, {transform_indices = @transform_8, window_bounds = array<i64: 1, 1>}, {pipeline_mode = #tpu.pipeline_mode<synchronous>, transform_indices = @transform_9, window_bounds = array<i64: 16, 1>}, {pipeline_mode = #tpu.pipeline_mode<synchronous>, transform_indices = @transform_10, window_bounds = array<i64: 16, 1>}, {pipeline_mode = #tpu.pipeline_mode<synchronous>, transform_indices = @transform_11, window_bounds = array<i64: 8, 16>}, {pipeline_mode = #tpu.pipeline_mode<synchronous>, transform_indices = @transform_12, window_bounds = array<i64: 8, 1>}, {transform_indices = @transform_13, window_bounds = array<i64: 1, 8, 128>}]} {
    %c0 = arith.constant 0 : index
    %c0_0 = arith.constant 0 : index
    %c0_1 = arith.constant 0 : index
    %0 = vector.load %arg1[%c0, %c0_0, %c0_1] : memref<1x8x128xf32, #tpu.memory_space<vmem>>, vector<1x8x128xf32>
    %1 = vector.shape_cast %0 : vector<1x8x128xf32> to vector<8x128xf32>
    %c0_2 = arith.constant 0 : index
    %c0_3 = arith.constant 0 : index
    %2 = vector.load %arg3[%c0_2, %c0_3] : memref<16x8xf32, #tpu.memory_space<vmem>>, vector<16x8xf32>
    %cst = arith.constant dense<0.000000e+00> : vector<16x128xf32>
    %3 = tpu.matmul %2, %1, %cst {dimension_numbers = #tpu.dot_dimension_numbers<[1], [0], [0], [1], [0, 0, 1, 1], [], []>} : vector<16x8xf32>, vector<8x128xf32>, vector<16x128xf32> -> vector<16x128xf32>
    %c0_4 = arith.constant 0 : index
    %c0_5 = arith.constant 0 : index
    %c0_6 = arith.constant 0 : index
    %4 = vector.load %arg2[%c0_4, %c0_5, %c0_6] : memref<1x16x1xf32, #tpu.memory_space<vmem>>, vector<1x16x1xf32>
    %5 = vector.shape_cast %4 : vector<1x16x1xf32> to vector<16x1xf32>
    %6 = vector.broadcast %5 : vector<16x1xf32> to vector<16x128xf32>
    %7 = arith.addf %3, %6 : vector<16x128xf32>
    %c0_7 = arith.constant 0 : index
    %c0_8 = arith.constant 0 : index
    %8 = memref.load %arg4[%c0_7, %c0_8] : memref<1x1xf32, #tpu.memory_space<smem>>
    %cst_9 = arith.constant 0.000000e+00 : f32
    %9 = vector.broadcast %cst_9 : f32 to vector<16x128xf32>
    %10 = arith.cmpf oge, %7, %9 : vector<16x128xf32>
    %11 = vector.broadcast %8 : f32 to vector<16x128xf32>
    %12 = arith.mulf %11, %7 : vector<16x128xf32>
    %13 = arith.select %10, %7, %12 : vector<16x128xi1>, vector<16x128xf32>
    %c0_10 = arith.constant 0 : index
    %c0_11 = arith.constant 0 : index
    %14 = vector.load %arg5[%c0_10, %c0_11] : memref<16x1xf32, #tpu.memory_space<vmem>>, vector<16x1xf32>
    %c0_12 = arith.constant 0 : index
    %c0_13 = arith.constant 0 : index
    %15 = vector.load %arg6[%c0_12, %c0_13] : memref<16x1xf32, #tpu.memory_space<vmem>>, vector<16x1xf32>
    %16 = vector.shape_cast %13 : vector<16x128xf32> to vector<1x16x128xf32>
    %cst_14 = arith.constant dense<0.000000e+00> : vector<1xf32>
    %17 = vector.multi_reduction <add>, %16, %cst_14 [1, 2] : vector<1x16x128xf32> to vector<1xf32>
    %18 = vector.shape_cast %17 : vector<1xf32> to vector<1x1x1xf32>
    %19 = vector.extract %18[0, 0, 0] : f32 from vector<1x1x1xf32>
    %20 = arith.mulf %13, %13 : vector<16x128xf32>
    %21 = vector.shape_cast %20 : vector<16x128xf32> to vector<1x16x128xf32>
    %cst_15 = arith.constant dense<0.000000e+00> : vector<1xf32>
    %22 = vector.multi_reduction <add>, %21, %cst_15 [1, 2] : vector<1x16x128xf32> to vector<1xf32>
    %23 = vector.shape_cast %22 : vector<1xf32> to vector<1x1x1xf32>
    %24 = vector.extract %23[0, 0, 0] : f32 from vector<1x1x1xf32>
    %cst_16 = arith.constant 2.048000e+03 : f32
    %25 = arith.divf %19, %cst_16 : f32
    %cst_17 = arith.constant 2.048000e+03 : f32
    %26 = arith.divf %24, %cst_17 : f32
    %27 = arith.mulf %25, %25 : f32
    %28 = arith.subf %26, %27 : f32
    %cst_18 = arith.constant 0.000000e+00 : f32
    %29 = arith.maximumf %28, %cst_18 : f32
    %30 = vector.broadcast %25 : f32 to vector<16x128xf32>
    %31 = arith.subf %13, %30 : vector<16x128xf32>
    %32 = vector.broadcast %14 : vector<16x1xf32> to vector<16x128xf32>
    %33 = arith.mulf %32, %31 : vector<16x128xf32>
    %cst_19 = arith.constant 9.99999993E-9 : f32
    %34 = arith.addf %29, %cst_19 : f32
    %35 = math.rsqrt %34 : f32
    %36 = vector.broadcast %35 : f32 to vector<16x128xf32>
    %37 = arith.mulf %33, %36 : vector<16x128xf32>
    %38 = vector.broadcast %15 : vector<16x1xf32> to vector<16x128xf32>
    %39 = arith.addf %37, %38 : vector<16x128xf32>
    %c0_20 = arith.constant 0 : index
    %c0_21 = arith.constant 0 : index
    %40 = vector.load %arg7[%c0_20, %c0_21] : memref<16x3xf32, #tpu.memory_space<vmem>>, vector<16x3xf32>
    %41 = tpu.iota {dimensions = array<i32: 1>} : vector<16x128xi32>
    %cst_22 = arith.constant 0.000000e+00 : f32
    %42 = vector.broadcast %cst_22 : f32 to vector<16x128xf32>
    %c2_i32 = arith.constant 2 : i32
    %43 = tpu.dynamic_rotate %39 by %c2_i32 dim 1 : vector<16x128xf32>, i32 -> vector<16x128xf32>
    %c2_i32_23 = arith.constant 2 : i32
    %44 = vector.broadcast %c2_i32_23 : i32 to vector<16x128xi32>
    %45 = arith.cmpi sge, %41, %44 : vector<16x128xi32>
    %cst_24 = arith.constant 0.000000e+00 : f32
    %46 = vector.broadcast %cst_24 : f32 to vector<16x128xf32>
    %47 = arith.select %45, %43, %46 : vector<16x128xi1>, vector<16x128xf32>
    %48 = vector.extract_strided_slice %40 {offsets = [0, 0], sizes = [16, 1], strides = [1, 1]} : vector<16x3xf32> to vector<16x1xf32>
    %49 = vector.broadcast %48 : vector<16x1xf32> to vector<16x128xf32>
    %50 = arith.mulf %49, %47 : vector<16x128xf32>
    %51 = arith.addf %42, %50 : vector<16x128xf32>
    %52 = vector.extract_strided_slice %40 {offsets = [0, 1], sizes = [16, 1], strides = [1, 1]} : vector<16x3xf32> to vector<16x1xf32>
    %53 = vector.broadcast %52 : vector<16x1xf32> to vector<16x128xf32>
    %54 = arith.mulf %53, %39 : vector<16x128xf32>
    %55 = arith.addf %51, %54 : vector<16x128xf32>
    %c126_i32 = arith.constant 126 : i32
    %56 = tpu.dynamic_rotate %39 by %c126_i32 dim 1 : vector<16x128xf32>, i32 -> vector<16x128xf32>
    %c126_i32_25 = arith.constant 126 : i32
    %57 = vector.broadcast %c126_i32_25 : i32 to vector<16x128xi32>
    %58 = arith.cmpi slt, %41, %57 : vector<16x128xi32>
    %cst_26 = arith.constant 0.000000e+00 : f32
    %59 = vector.broadcast %cst_26 : f32 to vector<16x128xf32>
    %60 = arith.select %58, %56, %59 : vector<16x128xi1>, vector<16x128xf32>
    %61 = vector.extract_strided_slice %40 {offsets = [0, 2], sizes = [16, 1], strides = [1, 1]} : vector<16x3xf32> to vector<16x1xf32>
    %62 = vector.broadcast %61 : vector<16x1xf32> to vector<16x128xf32>
    %63 = arith.mulf %62, %60 : vector<16x128xf32>
    %64 = arith.addf %55, %63 : vector<16x128xf32>
    %c0_27 = arith.constant 0 : index
    %c0_28 = arith.constant 0 : index
    %65 = vector.load %arg8[%c0_27, %c0_28] : memref<16x1xf32, #tpu.memory_space<vmem>>, vector<16x1xf32>
    %66 = vector.broadcast %65 : vector<16x1xf32> to vector<16x128xf32>
    %67 = arith.addf %64, %66 : vector<16x128xf32>
    %c0_29 = arith.constant 0 : index
    %c0_30 = arith.constant 0 : index
    %68 = memref.load %arg9[%c0_29, %c0_30] : memref<1x1xf32, #tpu.memory_space<smem>>
    %cst_31 = arith.constant 0.000000e+00 : f32
    %69 = vector.broadcast %cst_31 : f32 to vector<16x128xf32>
    %70 = arith.cmpf oge, %67, %69 : vector<16x128xf32>
    %71 = vector.broadcast %68 : f32 to vector<16x128xf32>
    %72 = arith.mulf %71, %67 : vector<16x128xf32>
    %73 = arith.select %70, %67, %72 : vector<16x128xi1>, vector<16x128xf32>
    %c0_32 = arith.constant 0 : index
    %c0_33 = arith.constant 0 : index
    %74 = vector.load %arg10[%c0_32, %c0_33] : memref<16x1xf32, #tpu.memory_space<vmem>>, vector<16x1xf32>
    %c0_34 = arith.constant 0 : index
    %c0_35 = arith.constant 0 : index
    %75 = vector.load %arg11[%c0_34, %c0_35] : memref<16x1xf32, #tpu.memory_space<vmem>>, vector<16x1xf32>
    %76 = vector.shape_cast %73 : vector<16x128xf32> to vector<1x16x128xf32>
    %cst_36 = arith.constant dense<0.000000e+00> : vector<1xf32>
    %77 = vector.multi_reduction <add>, %76, %cst_36 [1, 2] : vector<1x16x128xf32> to vector<1xf32>
    %78 = vector.shape_cast %77 : vector<1xf32> to vector<1x1x1xf32>
    %79 = vector.extract %78[0, 0, 0] : f32 from vector<1x1x1xf32>
    %80 = arith.mulf %73, %73 : vector<16x128xf32>
    %81 = vector.shape_cast %80 : vector<16x128xf32> to vector<1x16x128xf32>
    %cst_37 = arith.constant dense<0.000000e+00> : vector<1xf32>
    %82 = vector.multi_reduction <add>, %81, %cst_37 [1, 2] : vector<1x16x128xf32> to vector<1xf32>
    %83 = vector.shape_cast %82 : vector<1xf32> to vector<1x1x1xf32>
    %84 = vector.extract %83[0, 0, 0] : f32 from vector<1x1x1xf32>
    %cst_38 = arith.constant 2.048000e+03 : f32
    %85 = arith.divf %79, %cst_38 : f32
    %cst_39 = arith.constant 2.048000e+03 : f32
    %86 = arith.divf %84, %cst_39 : f32
    %87 = arith.mulf %85, %85 : f32
    %88 = arith.subf %86, %87 : f32
    %cst_40 = arith.constant 0.000000e+00 : f32
    %89 = arith.maximumf %88, %cst_40 : f32
    %90 = vector.broadcast %85 : f32 to vector<16x128xf32>
    %91 = arith.subf %73, %90 : vector<16x128xf32>
    %92 = vector.broadcast %74 : vector<16x1xf32> to vector<16x128xf32>
    %93 = arith.mulf %92, %91 : vector<16x128xf32>
    %cst_41 = arith.constant 9.99999993E-9 : f32
    %94 = arith.addf %89, %cst_41 : f32
    %95 = math.rsqrt %94 : f32
    %96 = vector.broadcast %95 : f32 to vector<16x128xf32>
    %97 = arith.mulf %93, %96 : vector<16x128xf32>
    %98 = vector.broadcast %75 : vector<16x1xf32> to vector<16x128xf32>
    %99 = arith.addf %97, %98 : vector<16x128xf32>
    %c0_42 = arith.constant 0 : index
    %c0_43 = arith.constant 0 : index
    %100 = vector.load %arg12[%c0_42, %c0_43] : memref<8x16xf32, #tpu.memory_space<vmem>>, vector<8x16xf32>
    %cst_44 = arith.constant dense<0.000000e+00> : vector<8x128xf32>
    %101 = tpu.matmul %100, %99, %cst_44 {dimension_numbers = #tpu.dot_dimension_numbers<[1], [0], [0], [1], [0, 0, 1, 1], [], []>} : vector<8x16xf32>, vector<16x128xf32>, vector<8x128xf32> -> vector<8x128xf32>
    %c0_45 = arith.constant 0 : index
    %c0_46 = arith.constant 0 : index
    %102 = vector.load %arg13[%c0_45, %c0_46] : memref<8x1xf32, #tpu.memory_space<vmem>>, vector<8x1xf32>
    %103 = vector.broadcast %102 : vector<8x1xf32> to vector<8x128xf32>
    %104 = arith.addf %101, %103 : vector<8x128xf32>
    %105 = arith.addf %1, %104 : vector<8x128xf32>
    %c0_47 = arith.constant 0 : index
    %c0_48 = arith.constant 0 : index
    %c0_49 = arith.constant 0 : index
    %106 = vector.load %arg14[%c0_47, %c0_48, %c0_49] : memref<1x8x128xf32, #tpu.memory_space<vmem>>, vector<1x8x128xf32>
    %107 = vector.shape_cast %106 : vector<1x8x128xf32> to vector<8x128xf32>
    %108 = vector.shape_cast %105 : vector<8x128xf32> to vector<1x8x128xf32>
    tpu.vector_store %arg14[%c0_47, %c0_48, %c0_49], %108 {strides = array<i32>} : memref<1x8x128xf32, #tpu.memory_space<vmem>>, vector<1x8x128xf32>,
    return
  }
  func.func @transform_0(%arg0: i32) -> (i32, i32, i32) {
    %c0_i32 = arith.constant 0 : i32
    %c0_i32_0 = arith.constant 0 : i32
    %c0_i32_1 = arith.constant 0 : i32
    return %arg0, %c0_i32, %c0_i32_0 : i32, i32, i32
  }
  func.func @transform_1(%arg0: i32) -> (i32, i32, i32) {
    %c0_i32 = arith.constant 0 : i32
    %c0_i32_0 = arith.constant 0 : i32
    %c0_i32_1 = arith.constant 0 : i32
    return %arg0, %c0_i32, %c0_i32_0 : i32, i32, i32
  }
  func.func @transform_2(%arg0: i32) -> (i32, i32) {
    %c0_i32 = arith.constant 0 : i32
    %c0_i32_0 = arith.constant 0 : i32
    %c0_i32_1 = arith.constant 0 : i32
    return %c0_i32, %c0_i32_0 : i32, i32
  }
  func.func @transform_3(%arg0: i32) -> (i32, i32) {
    %c0_i32 = arith.constant 0 : i32
    %c0_i32_0 = arith.constant 0 : i32
    %c0_i32_1 = arith.constant 0 : i32
    return %c0_i32, %c0_i32_0 : i32, i32
  }
  func.func @transform_4(%arg0: i32) -> (i32, i32) {
    %c0_i32 = arith.constant 0 : i32
    %c0_i32_0 = arith.constant 0 : i32
    %c0_i32_1 = arith.constant 0 : i32
    return %c0_i32, %c0_i32_0 : i32, i32
  }
  func.func @transform_5(%arg0: i32) -> (i32, i32) {
    %c0_i32 = arith.constant 0 : i32
    %c0_i32_0 = arith.constant 0 : i32
    %c0_i32_1 = arith.constant 0 : i32
    return %c0_i32, %c0_i32_0 : i32, i32
  }
  func.func @transform_6(%arg0: i32) -> (i32, i32) {
    %c0_i32 = arith.constant 0 : i32
    %c0_i32_0 = arith.constant 0 : i32
    %c0_i32_1 = arith.constant 0 : i32
    return %c0_i32, %c0_i32_0 : i32, i32
  }
  func.func @transform_7(%arg0: i32) -> (i32, i32) {
    %c0_i32 = arith.constant 0 : i32
    %c0_i32_0 = arith.constant 0 : i32
    %c0_i32_1 = arith.constant 0 : i32
    return %c0_i32, %c0_i32_0 : i32, i32
  }
  func.func @transform_8(%arg0: i32) -> (i32, i32) {
    %c0_i32 = arith.constant 0 : i32
    %c0_i32_0 = arith.constant 0 : i32
    %c0_i32_1 = arith.constant 0 : i32
    return %c0_i32, %c0_i32_0 : i32, i32
  }
  func.func @transform_9(%arg0: i32) -> (i32, i32) {
    %c0_i32 = arith.constant 0 : i32
    %c0_i32_0 = arith.constant 0 : i32
    %c0_i32_1 = arith.constant 0 : i32
    return %c0_i32, %c0_i32_0 : i32, i32
  }
  func.func @transform_10(%arg0: i32) -> (i32, i32) {
    %c0_i32 = arith.constant 0 : i32
    %c0_i32_0 = arith.constant 0 : i32
    %c0_i32_1 = arith.constant 0 : i32
    return %c0_i32, %c0_i32_0 : i32, i32
  }
  func.func @transform_11(%arg0: i32) -> (i32, i32) {
    %c0_i32 = arith.constant 0 : i32
    %c0_i32_0 = arith.constant 0 : i32
    %c0_i32_1 = arith.constant 0 : i32
    return %c0_i32, %c0_i32_0 : i32, i32
  }
  func.func @transform_12(%arg0: i32) -> (i32, i32) {
    %c0_i32 = arith.constant 0 : i32
    %c0_i32_0 = arith.constant 0 : i32
    %c0_i32_1 = arith.constant 0 : i32
    return %c0_i32, %c0_i32_0 : i32, i32
  }
  func.func @transform_13(%arg0: i32) -> (i32, i32, i32) {
    %c0_i32 = arith.constant 0 : i32
    %c0_i32_0 = arith.constant 0 : i32
    %c0_i32_1 = arith.constant 0 : i32
    return %arg0, %c0_i32, %c0_i32_0 : i32, i32, i32
  }
}

module attributes {stable_mosaic.version = 11 : i64} {
  func.func @pointwise_conv_kernel(%arg0: i32, %arg1: i32, %arg2: memref<1x8x128xf32, #tpu.memory_space<vmem>>, %arg3: memref<12x8xf32, #tpu.memory_space<vmem>>, %arg4: memref<12x1xf32, #tpu.memory_space<vmem>>, %arg5: memref<1x12x128xf32, #tpu.memory_space<vmem>>) attributes {dimension_semantics = [#tpu.dimension_semantics<parallel>, #tpu.dimension_semantics<parallel>], iteration_bounds = array<i64: 2, 1>, scalar_prefetch = 0 : i64, scratch_operands = 0 : i64, tpu.core_type = #tpu.core_type<tc>, window_params = [{transform_indices = @transform_0, window_bounds = array<i64: 1, 8, 128>}, {pipeline_mode = #tpu.pipeline_mode<synchronous>, transform_indices = @transform_1, window_bounds = array<i64: 12, 8>}, {pipeline_mode = #tpu.pipeline_mode<synchronous>, transform_indices = @transform_2, window_bounds = array<i64: 12, 1>}, {transform_indices = @transform_3, window_bounds = array<i64: 1, 12, 128>}]} {
    %c0 = arith.constant 0 : index
    %c0_0 = arith.constant 0 : index
    %c0_1 = arith.constant 0 : index
    %0 = vector.load %arg2[%c0, %c0_0, %c0_1] : memref<1x8x128xf32, #tpu.memory_space<vmem>>, vector<1x8x128xf32>
    %1 = vector.shape_cast %0 : vector<1x8x128xf32> to vector<8x128xf32>
    %c0_2 = arith.constant 0 : index
    %c0_3 = arith.constant 0 : index
    %2 = vector.load %arg3[%c0_2, %c0_3] : memref<12x8xf32, #tpu.memory_space<vmem>>, vector<12x8xf32>
    %cst = arith.constant dense<0.000000e+00> : vector<12x128xf32>
    %3 = tpu.matmul %2, %1, %cst {dimension_numbers = #tpu.dot_dimension_numbers<[1], [0], [0], [1], [0, 0, 1, 1], [], []>} : vector<12x8xf32>, vector<8x128xf32>, vector<12x128xf32> -> vector<12x128xf32>
    %c0_4 = arith.constant 0 : index
    %c0_5 = arith.constant 0 : index
    %4 = vector.load %arg4[%c0_4, %c0_5] : memref<12x1xf32, #tpu.memory_space<vmem>>, vector<12x1xf32>
    %5 = vector.broadcast %4 : vector<12x1xf32> to vector<12x128xf32>
    %6 = arith.addf %3, %5 : vector<12x128xf32>
    %cst_6 = arith.constant 0.000000e+00 : f32
    %7 = vector.broadcast %cst_6 : f32 to vector<12x128xf32>
    %8 = arith.maximumf %6, %7 : vector<12x128xf32>
    %c0_7 = arith.constant 0 : index
    %c0_8 = arith.constant 0 : index
    %c0_9 = arith.constant 0 : index
    %9 = vector.load %arg5[%c0_7, %c0_8, %c0_9] : memref<1x12x128xf32, #tpu.memory_space<vmem>>, vector<1x12x128xf32>
    %10 = vector.shape_cast %9 : vector<1x12x128xf32> to vector<12x128xf32>
    %11 = vector.shape_cast %8 : vector<12x128xf32> to vector<1x12x128xf32>
    tpu.vector_store %arg5[%c0_7, %c0_8, %c0_9], %11 {strides = array<i32>} : memref<1x12x128xf32, #tpu.memory_space<vmem>>, vector<1x12x128xf32>,
    return
  }
  func.func @transform_0(%arg0: i32, %arg1: i32) -> (i32, i32, i32) {
    %c0_i32 = arith.constant 0 : i32
    %c0_i32_0 = arith.constant 0 : i32
    return %arg0, %c0_i32, %arg1 : i32, i32, i32
  }
  func.func @transform_1(%arg0: i32, %arg1: i32) -> (i32, i32) {
    %c0_i32 = arith.constant 0 : i32
    %c0_i32_0 = arith.constant 0 : i32
    %c0_i32_1 = arith.constant 0 : i32
    return %c0_i32, %c0_i32_0 : i32, i32
  }
  func.func @transform_2(%arg0: i32, %arg1: i32) -> (i32, i32) {
    %c0_i32 = arith.constant 0 : i32
    %c0_i32_0 = arith.constant 0 : i32
    %c0_i32_1 = arith.constant 0 : i32
    return %c0_i32, %c0_i32_0 : i32, i32
  }
  func.func @transform_3(%arg0: i32, %arg1: i32) -> (i32, i32, i32) {
    %c0_i32 = arith.constant 0 : i32
    %c0_i32_0 = arith.constant 0 : i32
    return %arg0, %c0_i32, %arg1 : i32, i32, i32
  }
}

</mosaic_0001>

<bundles_post_ra>
// kernel: speaker_extractor_forward.6
= control target key start
LH: loop header
LB: loop body
LE: loop exit
PB: predicated region body
PF: predicated region fallthrough
CT: control target
= control target key end

     0   :  { %s451_s12 = smov 0   ;;  %s453_s13 = smov 0   ;;  %s490_s0 = inlined_call_operand.vmem [shape: f32[2,4,128], index: 0, kind: input, shape index: {}]   ;;  %s491_s1 = inlined_call_operand.vmem [shape: f32[8,4], index: 1, kind: input, shape index: {}]   ;;  %s492_s2 = inlined_call_operand.vmem [shape: f32[8,1], index: 2, kind: input, shape index: {}]   ;;  %s493_s3 = inlined_call_operand.vmem [shape: f32[2,8,128], index: 3, kind: output, shape index: {}]  }
   0x1   :  { %s455_s14 = smov 0  }
   0x2 LB: > { %s25_s15 = sadd.s32 1, %s422_s13  ;;  %p362_p0 = scmp.ge.s32.totalorder %s426_s14, 1  ;;  %s426_s14 = sphi %s455_s14, %s13_s14   ;;  %s422_s13 = sphi %s453_s13, %s495_s13   ;;  %s418_s12 = sphi %s451_s12, %s494_s12  }
   0x3   : > { %p27_p1 = scmp.ge.s32.totalorder %s25_s15, 2  ;;  %p155_p2 = scmp.lt.s32.totalorder %s426_s14, 3 }
   0x5   : > { %s497_s15 = smov (%p27_p1, %s25_s15), 0  ;;  %p156_p3 = pnand %p362_p0, %p155_p2 }
   0x6   : > { %p183_p4 = scmp.lt.s32.totalorder (!%p156_p3), %s418_s12, 1 }
   0x7   : > { %159 = sbr.rel (%p156_p3) target bundleno = 213 (0xd5), region = 32 }
   0xc   : > { %v428_v0 = vmov 0.0   ;;  %vm429_vm0 = vmmov 0   ;;  %v199_v1 = vld [vmem:[%s492_s2] sm:$0xff]  ;;  %s499_s12 = smov (!%p183_p4, %s418_s12), 1  ;;  %v430_v2 = vmov 0   ;;  %vm209_vm1 = vcmask 1043456  }
   0xd   : > { %371 = vmatprep.subr.mxu0 %v428_v0  ;;  %373 = vmatprep.mubr.msk.f32.mxu0 %vm429_vm0, %v428_v0  ;;  %s363_s18 = sshll.u32 %s499_s12, 2  ;;  %v198_v3 = vld [vmem:[%s491_s1] sm:$0xff]  ;;  %vm205_vm2 = vcmask 31744   ;;  %s364_s24 = sshll.u32 %s499_s12, 3 }
   0xe   : > { %403 = vset.pattern.permute.xlu0 %v430_v2  ;;  %s189_s21 = scalar_lea.vmem %s490_s0, %s363_s18  ;;  %s196_s27 = scalar_lea.vmem %s493_s3, %s364_s24 }
   0xf   : > { %202 = vperm.xlu0 %403, %v199_v1   ;;  %v197_v4 = vld [vmem:[%s189_s21] sm:$0xf] }
  0x10   : > { %372 = vmatpush3.msk.msra.mxu0 %vm209_vm1, %v197_v4 }
  0x11   : > { %374 = vmatmul.mubr.msk.f32.vlgmr.msra.gmra.mxu0 %vm205_vm2, %v198_v3 }
  0x8a   : > { %v203_v5 = vpop.permute.xlu0 %202 }
  0xd1   : > { %v279_v6 = vpop.f32.mrf.mxu0 }
  0xd2   : > { %v280_v7 = vadd.f32 %v279_v6, %v203_v5 }
  0xd3   : > { %v375_v8 = vpop.f32.mrf.mxu0 }
  0xd4   : > { %283 = vst [vmem:[%s196_s27] sm:$0xff] %v280_v7 }
  0xd5 PF: > { %s13_s14 = sadd.s32 1, %s426_s14   ;;  %s494_s12 = smov %s422_s13 }
  0xd6   : > { %p10_p5 = scmp.ge.s32.totalorder %s13_s14, 4   ;;  %s495_s13 = smov %s497_s15 }
  0xd8   :  { %12 = sbr.rel (!%p10_p5) target bundleno = 2 (0x2), region = 62 }

// kernel: speaker_extractor_forward.7
= control target key start
LH: loop header
LB: loop body
LE: loop exit
PB: predicated region body
PF: predicated region fallthrough
CT: control target
= control target key end

     0   :  { %s1091_s29 = smov 0   ;;  %s1176_s0 = inlined_call_operand.vmem [shape: f32[2,8,128], index: 0, kind: input, shape index: {}]   ;;  %s1177_s1 = inlined_call_operand.vmem [shape: f32[2,16,1], index: 1, kind: input, shape index: {}]   ;;  %s1178_s2 = inlined_call_operand.vmem [shape: f32[16,8], index: 2, kind: input, shape index: {}]   ;;  %s1179_s3 = inlined_call_operand.<no memory space> [shape: f32[1,1], index: 3, kind: input, shape index: {}]   ;;  %s1180_s4 = inlined_call_operand.vmem [shape: f32[16,1], index: 4, kind: input, shape index: {}]   ;;  %s1181_s5 = inlined_call_operand.vmem [shape: f32[16,1], index: 5, kind: input, shape index: {}]   ;;  %s1182_s6 = inlined_call_operand.vmem [shape: f32[16,3], index: 6, kind: input, shape index: {}]   ;;  %s1183_s7 = inlined_call_operand.vmem [shape: f32[16,1], index: 7, kind: input, shape index: {}]   ;;  %s1184_s8 = inlined_call_operand.<no memory space> [shape: f32[1,1], index: 8, kind: input, shape index: {}]   ;;  %s1185_s9 = inlined_call_operand.vmem [shape: f32[16,1], index: 9, kind: input, shape index: {}]   ;;  %s1186_s10 = inlined_call_operand.vmem [shape: f32[16,1], index: 10, kind: input, shape index: {}]   ;;  %s1187_s11 = inlined_call_operand.vmem [shape: f32[8,16], index: 11, kind: input, shape index: {}]   ;;  %s1188_s12 = inlined_call_operand.vmem [shape: f32[8,1], index: 12, kind: input, shape index: {}]   ;;  %s1189_s13 = inlined_call_operand.vmem [shape: f32[2,8,128], index: 13, kind: output, shape index: {}]  }
   0x1   :  { %18 = sst [smem:[#allocation2]] %s1179_s3 }
   0x2   :  { %19 = sst [smem:[#allocation3]] %s1184_s8 }
   0x3 LB: > { %s927_s30 = sadd.s32 4294967295, %s1005_s29   ;;  %p931_p0 = scmp.ge.s32.totalorder %s1005_s29, 1  ;;  %s1005_s29 = sphi %s1091_s29, %s25_s29  }
   0x4   : > { %p398_p1 = scmp.lt.s32.totalorder %s1005_s29, 3 }
   0x6   : > { %p399_p2 = pnand %p931_p0, %p398_p1 }
   0x7   : > { %p445_p3 = scmp.lt.s32.totalorder (!%p399_p2), %s927_s30, 1  ;;  %s555_s14 = sld [smem:[#allocation2]] (!%p399_p2) }
   0x8   : > { %402 = sbr.rel (%p399_p2) target bundleno = 1122 (0x462), region = 72  ;;  %s1010_s27 = smov (!%p399_p2), 0.0  }
   0x9   : > { %s1012_s16 = smov (!%p399_p2), 127  }
   0xd   : > { %v459_v0 = vld [vmem:[%s1178_s2] sm:$0xff]  ;;  %vm473_vm0 = vcmask 64512   ;;  %v1007_v1 = vmov 0   ;;  %s1191_s30 = smov (!%p445_p3, %s927_s30), 1  ;;  %v460_v3 = vld [vmem:[%s1178_s2 + $0x8] sm:$0xff]  ;;  %v558_v12 = vstv %s555_s14  ;;  %v1008_v27 = vmov 1  }
   0xe   : > { %950 = vmatprep.mubr.msk.f32.mxu0 %vm473_vm0, %v459_v0  ;;  %988 = vset.pattern.permute.xlu0 %v1007_v1  ;;  %s932_s8 = sshll.u32 %s1191_s30, 3  ;;  %s941_s15 = sshll.u32 %s1191_s30, 4  ;;  %v563_v6 = vld [vmem:[%s1180_s4] sm:$0xff]  ;;  %v566_v8 = vld [vmem:[%s1181_s5 + $0x8] sm:$0xff]  ;;  %v1009_v28 = vmov 2   ;;  %vm1014_vm7 = vmmov 0  }
   0xf   : > { %989 = vset.pattern.permute.xlu1 %v1007_v1  ;;  %s448_s18 = scalar_lea.vmem %s1176_s0, %s932_s8  ;;  %s453_s23 = scalar_lea.vmem %s1177_s1, %s941_s15  ;;  %v565_v7 = vld [vmem:[%s1181_s5] sm:$0xff]  ;;  %v564_v24 = vld [vmem:[%s1180_s4 + $0x8] sm:$0xff]  ;;  %vm786_vm8 = vcmask 130048  }
  0x10   : > { %v1112_v2 = vld [vmem:[%s448_s18] sm:$0xff]  ;;  %v462_v5 = vld [vmem:[%s453_s23 + $0x8] sm:$0xff]  ;;  %s1011_s15 = smov 1  }
  0x11   : > { %948 = vmatprep.subr.mxu0 %v1112_v2  ;;  %v461_v4 = vld [vmem:[%s453_s23] sm:$0xff]  ;;  %v633_v25 = vld [vmem:[%s1182_s6 + $0x8] sm:$0xff] }
  0x12   : > { %949 = vmatpush3.msra.mxu0 %v1112_v2  ;;  %465 = vperm.xlu0 %988, %v461_v4   ;;  %v632_v26 = vld [vmem:[%s1182_s6] sm:$0xff]  ;;  %v689_v60 = vld [vmem:[%s1183_s7 + $0x8] sm:$0xff]  ;;  %v634_v4 = vlaneseq }
  0x13   : > { %951 = vmatmul.mubr.msk.f32.vlgmr.msra.gmra.mxu0 %vm473_vm0, %v460_v3  ;;  %v688_v59 = vld [vmem:[%s1183_s7] sm:$0xff] }
  0x16   : > { %470 = vperm.xlu0 %988, %v462_v5   ;;  %v635_v5 = vand.u32 127, %v634_v4 }
  0x18   : > { %vm640_vm3 = vcmp.ge.s32.totalorder %v635_v5, 1  ;;  %vm673_vm4 = vcmp.lt.s32.totalorder %v635_v5, 127 }
  0x1a   : > { %603 = vperm.xlu0 %988, %v563_v6  }
  0x1e   : > { %622 = vperm.xlu0 %988, %v565_v7  }
  0x22   : > { %627 = vperm.xlu0 %988, %v566_v8  }
  0x26   : > { %991 = vset.pattern.permute.xlu0 %v1008_v27 }
  0x27   : > { %662 = vperm.xlu0 %991, %v633_v25  }
  0x2b   : > { %992 = vset.pattern.permute.xlu0 %v1007_v1 }
  0x2c   : > { %645 = vperm.xlu0 %992, %v632_v26  }
  0x30   : > { %650 = vperm.xlu0 %992, %v633_v25  }
  0x8d   : > { %v466_v9 = vpop.permute.xlu0 %465 }
  0x91   : > { %v471_v10 = vpop.permute.xlu0 %470 }
  0x95   : > { %v604_v45 = vpop.permute.xlu0 %603 }
  0x99   : > { %v623_v49 = vpop.permute.xlu0 %622 }
  0x9d   : > { %v628_v56 = vpop.permute.xlu0 %627 }
  0xa2   : > { %v663_v61 = vpop.permute.xlu0 %662 }
  0xa7   : > { %v646_v63 = vpop.permute.xlu0 %645 }
  0xd3   : > { %v952_v11 = vpop.f32.mrf.mxu0 }
  0xd4   : > { %v552_v13 = vadd.f32 %v952_v11, %v471_v10 }
  0xd5   : > { %v546_v14 = vpop.f32.mrf.mxu0 }
  0xd6   : > { %v560_v15 = vmul.f32 %v558_v12, %v552_v13  ;;  %v547_v16 = vadd.f32 %v546_v14, %v466_v9  ;;  %vm557_vm1 = vcmp.ge.f32.partialorder %v552_v13, 0.0 }
  0xd8   : > { %v559_v17 = vmul.f32 %v558_v12, %v547_v16  ;;  %vm556_vm2 = vcmp.ge.f32.partialorder %v547_v16, 0.0  ;;  %v562_v19 = vsel %vm557_vm1, %v552_v13, %v560_v15 }
  0xd9   : > { %v578_v22 = vmul.f32 %v562_v19, %v562_v19 }
  0xda   : > { %v561_v18 = vsel %vm556_vm2, %v547_v16, %v559_v17 }
  0xdb   : > { %v567_v20 = vadd.f32 %v562_v19, %v561_v18  ;;  %v577_v21 = vmul.f32 %v561_v18, %v561_v18 }
  0xdd   : > { %568 = vadd.xlane.f32.xlu1 %v567_v20  ;;  %v579_v23 = vadd.f32 %v578_v22, %v577_v21 }
  0xe1   : > { %580 = vadd.xlane.f32.xlu1 %v579_v23 }
  0xf2   : > { %608 = vperm.xlu1 %989, %v564_v24  }
  0xf6   : > { %990 = vset.pattern.permute.xlu1 %v1008_v27 }
  0xf7   : > { %658 = vperm.xlu1 %990, %v632_v26  }
  0xfb   : > { %993 = vset.pattern.permute.xlu1 %v1009_v28 }
  0xfc   : > { %677 = vperm.xlu1 %993, %v632_v26  }
 0x100   : > { %681 = vperm.xlu1 %993, %v633_v25  }
 0x104   : > { %994 = vset.pattern.permute.xlu1 %v1007_v1  ;;  %v651_v1 = vpop.permute.xlu0 %650 }
 0x166   : > { %v569_v29 = vpop.xlane.xlu1 %568 }
 0x167   : > { %v570_v30 = vrot.slane %v569_v29, 4 }
 0x169   : > { %v571_v31 = vadd.f32 %v570_v30, %v569_v29 }
 0x16a   : > { %v581_v32 = vpop.xlane.xlu1 %580 }
 0x16b   : > { %v572_v33 = vrot.slane %v571_v31, 2  ;;  %v582_v34 = vrot.slane %v581_v32, 4 }
 0x16d   : > { %v583_v35 = vadd.f32 %v582_v34, %v581_v32  ;;  %v573_v36 = vadd.f32 %v572_v33, %v571_v31 }
 0x16e   : > { %v609_v50 = vpop.permute.xlu1 %608 }
 0x16f   : > { %v584_v37 = vrot.slane %v583_v35, 2  ;;  %v574_v38 = vrot.slane %v573_v36, 1 }
 0x171   : > { %v575_v39 = vadd.f32 %v574_v38, %v573_v36  ;;  %v585_v40 = vadd.f32 %v584_v37, %v583_v35  ;;  %v710_v37 = vld [vmem:[%s1185_s9] sm:$0xff]  ;;  %v713_v38 = vld [vmem:[%s1186_s10 + $0x8] sm:$0xff] }
 0x172   : > { %v659_v62 = vpop.permute.xlu1 %658 }
 0x173   : > { %960 = vpush %v575_v39  ;;  %v586_v41 = vrot.slane %v585_v40, 1  ;;  %v711_v39 = vld [vmem:[%s1185_s9 + $0x8] sm:$0xff] }
 0x175   : > { %v587_v42 = vadd.f32 %v586_v41, %v585_v40  ;;  %v780_v40 = vld [vmem:[%s1188_s12] sm:$0xff] }
 0x176   : > { %v712_v41 = vld [vmem:[%s1186_s10] sm:$0xff] }
 0x177   : > { %962 = vpush %v587_v42  ;;  %v678_v0 = vpop.permute.xlu1 %677 }
 0x17b   : > { %v682_v3 = vpop.permute.xlu1 %681 }
 0x1a4   : > { %s961_s21 = spop %960 }
 0x1a5   : > { %s591_s22 = smul.f32 0.00048828125, %s961_s21  ;;  %s702_s21 = sld [smem:[#allocation3]] }
 0x1a7   : > { %s595_s23 = smul.f32 %s591_s22, %s591_s22  ;;  %v598_v46 = vstv %s591_s22 }
 0x1a8   : > { %s963_s24 = spop %962  ;;  %v599_v47 = vsub.f32 %v561_v18, %v598_v46  ;;  %v600_v48 = vsub.f32 %v562_v19, %v598_v46 }
 0x1a9   : > { %s594_s25 = smul.f32 0.00048828125, %s963_s24 }
 0x1aa   : > { %v612_v51 = vmul.f32 %v609_v50, %v600_v48  ;;  %v611_v52 = vmul.f32 %v604_v45, %v599_v47 }
 0x1ab   : > { %s596_s26 = ssub.f32 %s594_s25, %s595_s23  ;;  %v705_v24 = vstv %s702_s21 }
 0x1ad   : > { %s597_s28 = smax.f32 %s1010_s27, %s596_s26 }
 0x1ae   : > { %s613_s3 = sadd.f32 1e-08, %s597_s28 }
 0x1b0   : > { %v614_v43 = vstv %s613_s3 }
 0x1b1   : > { %995 = vrsqrt.f32 %v614_v43 }
 0x1be   : > { %v996_v44 = vpop.eup %995 }
 0x1bf   : > { %964 = vpush %v996_v44 }
 0x1f0   : > { %s965_s14 = spop %964 }
 0x1f1   : > { %v617_v53 = vstv %s965_s14  ;;  %s457_s14 = scalar_lea.vmem %s1189_s13, %s932_s8 }
 0x1f2   : > { %v618_v54 = vmul.f32 %v617_v53, %v611_v52  ;;  %v619_v55 = vmul.f32 %v617_v53, %v612_v51 }
 0x1f4   : > { %v630_v57 = vadd.f32 %v623_v49, %v618_v54  ;;  %v631_v58 = vadd.f32 %v628_v56, %v619_v55  ;;  %v1013_v56 = vmov 0.0  }
 0x1f5   : > { %953 = vmatprep.subr.mxu1 %v1013_v56  ;;  %957 = vmatprep.mubr.msk.f32.mxu1 %vm1014_vm7, %v1013_v56 }
 0x1f6   : > { %636 = vrot.lane.b32.xlu0 %v630_v57, %s1011_s15  ;;  %638 = vrot.lane.b32.xlu1 %v631_v58, %s1011_s15  ;;  %v666_v16 = vmul.f32 %v663_v61, %v631_v58  ;;  %v665_v17 = vmul.f32 %v659_v62, %v630_v57 }
 0x1fa   : > { %669 = vrot.lane.b32.xlu0 %v630_v57, %s1012_s16  ;;  %671 = vrot.lane.b32.xlu1 %v631_v58, %s1012_s16 }
 0x1fe   : > { %692 = vperm.xlu0 %992, %v688_v59   ;;  %697 = vperm.xlu1 %994, %v689_v60  }
 0x268   : > { %v637_v6 = vpop.permute.xlu0 %636  ;;  %v639_v7 = vpop.permute.xlu1 %638 }
 0x269   : > { %v641_v10 = vsel %vm640_vm3, %v637_v6, 0.0  ;;  %v642_v11 = vsel %vm640_vm3, %v639_v7, 0.0 }
 0x26a   : > { %v653_v14 = vmul.f32 %v646_v63, %v641_v10  ;;  %v654_v15 = vmul.f32 %v651_v1, %v642_v11  ;;  %v779_v10 = vld [vmem:[%s1187_s11] sm:$0xff] }
 0x26c   : > { %v670_v8 = vpop.permute.xlu0 %669  ;;  %v672_v9 = vpop.permute.xlu1 %671  ;;  %v667_v20 = vadd.f32 %v665_v17, %v653_v14  ;;  %v668_v21 = vadd.f32 %v666_v16, %v654_v15 }
 0x26d   : > { %v674_v12 = vsel %vm673_vm4, %v670_v8, 0.0  ;;  %v675_v13 = vsel %vm673_vm4, %v672_v9, 0.0 }
 0x26e   : > { %v684_v18 = vmul.f32 %v678_v0, %v674_v12  ;;  %v685_v19 = vmul.f32 %v682_v3, %v675_v13 }
 0x270   : > { %v686_v22 = vadd.f32 %v684_v18, %v667_v20  ;;  %v687_v23 = vadd.f32 %v685_v19, %v668_v21 }
 0x279   : > { %v693_v25 = vpop.permute.xlu0 %692  ;;  %v698_v26 = vpop.permute.xlu1 %697 }
 0x27a   : > { %v700_v27 = vadd.f32 %v693_v25, %v686_v22  ;;  %v701_v28 = vadd.f32 %v698_v26, %v687_v23 }
 0x27c   : > { %vm703_vm5 = vcmp.ge.f32.partialorder %v700_v27, 0.0  ;;  %v706_v29 = vmul.f32 %v705_v24, %v700_v27  ;;  %vm704_vm6 = vcmp.ge.f32.partialorder %v701_v28, 0.0  ;;  %v707_v30 = vmul.f32 %v705_v24, %v701_v28 }
 0x27e   : > { %v708_v31 = vsel %vm703_vm5, %v700_v27, %v706_v29  ;;  %v709_v32 = vsel %vm704_vm6, %v701_v28, %v707_v30 }
 0x27f   : > { %v714_v33 = vadd.f32 %v709_v32, %v708_v31  ;;  %v724_v34 = vmul.f32 %v708_v31, %v708_v31  ;;  %v725_v35 = vmul.f32 %v709_v32, %v709_v32 }
 0x281   : > { %715 = vadd.xlane.f32.xlu1 %v714_v33  ;;  %v726_v36 = vadd.f32 %v725_v35, %v724_v34 }
 0x283   : > { %727 = vadd.xlane.f32.xlu0 %v726_v36 }
 0x292   : > { %750 = vperm.xlu1 %994, %v710_v37  }
 0x296   : > { %774 = vperm.xlu1 %994, %v713_v38  }
 0x299   : > { %755 = vperm.xlu0 %992, %v711_v39  }
 0x29a   : > { %783 = vperm.xlu1 %994, %v780_v40  }
 0x29d   : > { %769 = vperm.xlu0 %992, %v712_v41  }
 0x30a   : > { %v716_v42 = vpop.xlane.xlu1 %715 }
 0x30b   : > { %v717_v43 = vrot.slane %v716_v42, 4 }
 0x30c   : > { %v728_v44 = vpop.xlane.xlu0 %727 }
 0x30d   : > { %v718_v45 = vadd.f32 %v717_v43, %v716_v42  ;;  %v729_v46 = vrot.slane %v728_v44, 4 }
 0x30e   : > { %v751_v62 = vpop.permute.xlu1 %750 }
 0x30f   : > { %v719_v47 = vrot.slane %v718_v45, 2  ;;  %v730_v48 = vadd.f32 %v729_v46, %v728_v44 }
 0x311   : > { %v731_v49 = vrot.slane %v730_v48, 2  ;;  %v720_v50 = vadd.f32 %v719_v47, %v718_v45 }
 0x312   : > { %v775_v6 = vpop.permute.xlu1 %774 }
 0x313   : > { %v721_v51 = vrot.slane %v720_v50, 1  ;;  %v732_v52 = vadd.f32 %v731_v49, %v730_v48 }
 0x314   : > { %v756_v63 = vpop.permute.xlu0 %755 }
 0x315   : > { %v722_v53 = vadd.f32 %v721_v51, %v720_v50  ;;  %v733_v54 = vrot.slane %v732_v52, 1 }
 0x316   : > { %v784_v11 = vpop.permute.xlu1 %783 }
 0x317   : > { %966 = vpush %v722_v53  ;;  %v734_v55 = vadd.f32 %v733_v54, %v732_v52 }
 0x318   : > { %v770_v8 = vpop.permute.xlu0 %769 }
 0x319   : > { %968 = vpush %v734_v55 }
 0x348   : > { %s967_s17 = spop %966 }
 0x349   : > { %s738_s18 = smul.f32 0.00048828125, %s967_s17 }
 0x34a   : > { %s969_s19 = spop %968 }
 0x34b   : > { %s742_s20 = smul.f32 %s738_s18, %s738_s18  ;;  %v745_v59 = vstv %s738_s18 }
 0x34c   : > { %s741_s21 = smul.f32 0.00048828125, %s969_s19  ;;  %v746_v60 = vsub.f32 %v708_v31, %v745_v59  ;;  %v747_v61 = vsub.f32 %v709_v32, %v745_v59 }
 0x34e   : > { %s743_s22 = ssub.f32 %s741_s21, %s742_s20  ;;  %v758_v0 = vmul.f32 %v751_v62, %v746_v60  ;;  %v759_v1 = vmul.f32 %v756_v63, %v747_v61 }
 0x350   : > { %s744_s23 = smax.f32 %s1010_s27, %s743_s22 }
 0x351   : > { %s760_s24 = sadd.f32 1e-08, %s744_s23 }
 0x353   : > { %v761_v57 = vstv %s760_s24 }
 0x354   : > { %997 = vrsqrt.f32 %v761_v57 }
 0x361   : > { %v998_v58 = vpop.eup %997 }
 0x362   : > { %970 = vpush %v998_v58 }
 0x393   : > { %s971_s25 = spop %970 }
 0x394   : > { %v764_v3 = vstv %s971_s25 }
 0x395   : > { %v765_v4 = vmul.f32 %v764_v3, %v758_v0  ;;  %v766_v5 = vmul.f32 %v764_v3, %v759_v1 }
 0x397   : > { %v778_v7 = vadd.f32 %v775_v6, %v766_v5  ;;  %v777_v9 = vadd.f32 %v770_v8, %v765_v4 }
 0x399   : > { %954 = vmatpush3.msra.mxu1 %v778_v7 }
 0x39a   : > { %955 = vmatprep.subr.mxu1 %v1013_v56 }
 0x39b   : > { %956 = vmatpush3.msra.mxu1 %v777_v9 }
 0x39c   : > { %958 = vmatmul.mubr.msk.f32.vlgmr.msra.gmra.mxu1 %vm786_vm8, %v779_v10 }
 0x45c   : > { %v856_v12 = vpop.f32.mrf.mxu1 }
 0x45d   : > { %v857_v13 = vadd.f32 %v856_v12, %v784_v11 }
 0x45e   : > { %v959_v14 = vpop.f32.mrf.mxu1 }
 0x45f   : > { %v860_v15 = vadd.f32 %v857_v13, %v1112_v2 }
 0x461   : > { %861 = vst [vmem:[%s457_s14] sm:$0xff] %v860_v15 }
 0x462 PF: > { %s25_s29 = sadd.s32 1, %s1005_s29  }
 0x463   : > { %p22_p4 = scmp.ge.s32.totalorder %s25_s29, 4  }
 0x465   :  { %24 = sbr.rel (!%p22_p4) target bundleno = 3 (0x3), region = 105 }

// kernel: speaker_extractor_forward.11
= control target key start
LH: loop header
LB: loop body
LE: loop exit
PB: predicated region body
PF: predicated region fallthrough
CT: control target
= control target key end

     0   :  { %s472_s12 = smov 0   ;;  %s474_s13 = smov 0   ;;  %s517_s0 = inlined_call_operand.vmem [shape: f32[2,8,128], index: 0, kind: input, shape index: {}]   ;;  %s518_s1 = inlined_call_operand.vmem [shape: f32[12,8], index: 1, kind: input, shape index: {}]   ;;  %s519_s2 = inlined_call_operand.vmem [shape: f32[12,1], index: 2, kind: input, shape index: {}]   ;;  %s520_s3 = inlined_call_operand.vmem [shape: f32[2,12,128], index: 3, kind: output, shape index: {}]  }
   0x1   :  { %s476_s14 = smov 0  }
   0x2 LB: > { %s25_s15 = sadd.s32 1, %s445_s13  ;;  %p384_p0 = scmp.ge.s32.totalorder %s449_s14, 1  ;;  %s449_s14 = sphi %s476_s14, %s13_s14   ;;  %s445_s13 = sphi %s474_s13, %s522_s13   ;;  %s441_s12 = sphi %s472_s12, %s521_s12  }
   0x3   : > { %p27_p1 = scmp.ge.s32.totalorder %s25_s15, 2  ;;  %p155_p2 = scmp.lt.s32.totalorder %s449_s14, 3 }
   0x5   : > { %s524_s15 = smov (%p27_p1, %s25_s15), 0  ;;  %p156_p3 = pnand %p384_p0, %p155_p2 }
   0x6   : > { %p184_p4 = scmp.lt.s32.totalorder (!%p156_p3), %s441_s12, 1 }
   0x7   : > { %159 = sbr.rel (%p156_p3) target bundleno = 218 (0xda), region = 32 }
   0xc   : > { %v200_v0 = vld [vmem:[%s518_s1] sm:$0xff]  ;;  %vm214_vm0 = vcmask 64512   ;;  %v451_v1 = vmov 0   ;;  %s526_s12 = smov (!%p184_p4, %s441_s12), 1  ;;  %v203_v3 = vld [vmem:[%s519_s2 + $0x8] sm:$0xf] }
   0xd   : > { %398 = vmatprep.mubr.msk.f32.mxu0 %vm214_vm0, %v200_v0  ;;  %426 = vset.pattern.permute.xlu0 %v451_v1  ;;  %v202_v2 = vld [vmem:[%s519_s2] sm:$0xff]  ;;  %s385_s22 = sshll.u32 %s526_s12, 3  ;;  %v201_v5 = vld [vmem:[%s518_s1 + $0x8] sm:$0xf]  ;;  %s392_s28 = sshll.u32 %s526_s12, 4 }
   0xe   : > { %206 = vperm.xlu0 %426, %v202_v2   ;;  %s190_s25 = scalar_lea.vmem %s517_s0, %s385_s22  ;;  %s198_s4 = scalar_lea.vmem %s520_s3, %s392_s28 }
   0xf   : > { %v199_v4 = vld [vmem:[%s190_s25] sm:$0xff] }
  0x10   : > { %396 = vmatprep.subr.mxu0 %v199_v4 }
  0x11   : > { %397 = vmatpush3.msra.mxu0 %v199_v4 }
  0x12   : > { %211 = vperm.xlu0 %426, %v203_v3   ;;  %399 = vmatmul.mubr.msk.f32.vlgmr.msra.gmra.mxu0 %vm214_vm0, %v201_v5 }
  0x89   : > { %v207_v6 = vpop.permute.xlu0 %206 }
  0x8d   : > { %v212_v7 = vpop.permute.xlu0 %211 }
  0xd2   : > { %v400_v8 = vpop.f32.mrf.mxu0 }
  0xd3   : > { %v293_v9 = vadd.f32 %v400_v8, %v212_v7 }
  0xd4   : > { %v287_v10 = vpop.f32.mrf.mxu0 }
  0xd5   : > { %v297_v11 = vmax.f32 %v293_v9, 0.0  ;;  %v288_v12 = vadd.f32 %v287_v10, %v207_v6 }
  0xd7   : > { %299 = vst [vmem:[%s198_s4 + $0x8] sm:$0xf] %v297_v11  ;;  %v296_v13 = vmax.f32 %v288_v12, 0.0 }
  0xd9   : > { %298 = vst [vmem:[%s198_s4] sm:$0xff] %v296_v13 }
  0xda PF: > { %s13_s14 = sadd.s32 1, %s449_s14   ;;  %s521_s12 = smov %s445_s13 }
  0xdb   : > { %p10_p5 = scmp.ge.s32.totalorder %s13_s14, 4   ;;  %s522_s13 = smov %s524_s15 }
  0xdd   :  { %12 = sbr.rel (!%p10_p5) target bundleno = 2 (0x2), region = 62 }

// kernel: speaker_extractor_forward.8
= control target key start
LH: loop header
LB: loop body
LE: loop exit
PB: predicated region body
PF: predicated region fallthrough
CT: control target
= control target key end

     0   :  { %s1091_s29 = smov 0   ;;  %s1176_s0 = inlined_call_operand.vmem [shape: f32[2,8,128], index: 0, kind: input, shape index: {}]   ;;  %s1177_s1 = inlined_call_operand.vmem [shape: f32[2,16,1], index: 1, kind: input, shape index: {}]   ;;  %s1178_s2 = inlined_call_operand.vmem [shape: f32[16,8], index: 2, kind: input, shape index: {}]   ;;  %s1179_s3 = inlined_call_operand.<no memory space> [shape: f32[1,1], index: 3, kind: input, shape index: {}]   ;;  %s1180_s4 = inlined_call_operand.vmem [shape: f32[16,1], index: 4, kind: input, shape index: {}]   ;;  %s1181_s5 = inlined_call_operand.vmem [shape: f32[16,1], index: 5, kind: input, shape index: {}]   ;;  %s1182_s6 = inlined_call_operand.vmem [shape: f32[16,3], index: 6, kind: input, shape index: {}]   ;;  %s1183_s7 = inlined_call_operand.vmem [shape: f32[16,1], index: 7, kind: input, shape index: {}]   ;;  %s1184_s8 = inlined_call_operand.<no memory space> [shape: f32[1,1], index: 8, kind: input, shape index: {}]   ;;  %s1185_s9 = inlined_call_operand.vmem [shape: f32[16,1], index: 9, kind: input, shape index: {}]   ;;  %s1186_s10 = inlined_call_operand.vmem [shape: f32[16,1], index: 10, kind: input, shape index: {}]   ;;  %s1187_s11 = inlined_call_operand.vmem [shape: f32[8,16], index: 11, kind: input, shape index: {}]   ;;  %s1188_s12 = inlined_call_operand.vmem [shape: f32[8,1], index: 12, kind: input, shape index: {}]   ;;  %s1189_s13 = inlined_call_operand.vmem [shape: f32[2,8,128], index: 13, kind: output, shape index: {}]  }
   0x1   :  { %18 = sst [smem:[#allocation2]] %s1179_s3 }
   0x2   :  { %19 = sst [smem:[#allocation3]] %s1184_s8 }
   0x3 LB: > { %s927_s30 = sadd.s32 4294967295, %s1005_s29   ;;  %p931_p0 = scmp.ge.s32.totalorder %s1005_s29, 1  ;;  %s1005_s29 = sphi %s1091_s29, %s25_s29  }
   0x4   : > { %p398_p1 = scmp.lt.s32.totalorder %s1005_s29, 3 }
   0x6   : > { %p399_p2 = pnand %p931_p0, %p398_p1 }
   0x7   : > { %p445_p3 = scmp.lt.s32.totalorder (!%p399_p2), %s927_s30, 1  ;;  %s555_s14 = sld [smem:[#allocation2]] (!%p399_p2) }
   0x8   : > { %402 = sbr.rel (%p399_p2) target bundleno = 1122 (0x462), region = 72  ;;  %s1010_s27 = smov (!%p399_p2), 0.0  }
   0x9   : > { %s1012_s16 = smov (!%p399_p2), 126  }
   0xd   : > { %v459_v0 = vld [vmem:[%s1178_s2] sm:$0xff]  ;;  %vm473_vm0 = vcmask 64512   ;;  %v1007_v1 = vmov 0   ;;  %s1191_s30 = smov (!%p445_p3, %s927_s30), 1  ;;  %v460_v3 = vld [vmem:[%s1178_s2 + $0x8] sm:$0xff]  ;;  %v558_v12 = vstv %s555_s14  ;;  %v1008_v27 = vmov 1  }
   0xe   : > { %950 = vmatprep.mubr.msk.f32.mxu0 %vm473_vm0, %v459_v0  ;;  %988 = vset.pattern.permute.xlu0 %v1007_v1  ;;  %s932_s8 = sshll.u32 %s1191_s30, 3  ;;  %s941_s15 = sshll.u32 %s1191_s30, 4  ;;  %v563_v6 = vld [vmem:[%s1180_s4] sm:$0xff]  ;;  %v566_v8 = vld [vmem:[%s1181_s5 + $0x8] sm:$0xff]  ;;  %v1009_v28 = vmov 2   ;;  %vm1014_vm7 = vmmov 0  }
   0xf   : > { %989 = vset.pattern.permute.xlu1 %v1007_v1  ;;  %s448_s18 = scalar_lea.vmem %s1176_s0, %s932_s8  ;;  %s453_s23 = scalar_lea.vmem %s1177_s1, %s941_s15  ;;  %v565_v7 = vld [vmem:[%s1181_s5] sm:$0xff]  ;;  %v564_v24 = vld [vmem:[%s1180_s4 + $0x8] sm:$0xff]  ;;  %vm786_vm8 = vcmask 130048  }
  0x10   : > { %v1112_v2 = vld [vmem:[%s448_s18] sm:$0xff]  ;;  %v462_v5 = vld [vmem:[%s453_s23 + $0x8] sm:$0xff]  ;;  %s1011_s15 = smov 2  }
  0x11   : > { %948 = vmatprep.subr.mxu0 %v1112_v2  ;;  %v461_v4 = vld [vmem:[%s453_s23] sm:$0xff]  ;;  %v633_v25 = vld [vmem:[%s1182_s6 + $0x8] sm:$0xff] }
  0x12   : > { %949 = vmatpush3.msra.mxu0 %v1112_v2  ;;  %465 = vperm.xlu0 %988, %v461_v4   ;;  %v632_v26 = vld [vmem:[%s1182_s6] sm:$0xff]  ;;  %v689_v60 = vld [vmem:[%s1183_s7 + $0x8] sm:$0xff]  ;;  %v634_v4 = vlaneseq }
  0x13   : > { %951 = vmatmul.mubr.msk.f32.vlgmr.msra.gmra.mxu0 %vm473_vm0, %v460_v3  ;;  %v688_v59 = vld [vmem:[%s1183_s7] sm:$0xff] }
  0x16   : > { %470 = vperm.xlu0 %988, %v462_v5   ;;  %v635_v5 = vand.u32 127, %v634_v4 }
  0x18   : > { %vm640_vm3 = vcmp.ge.s32.totalorder %v635_v5, 2  ;;  %vm673_vm4 = vcmp.lt.s32.totalorder %v635_v5, 126 }
  0x1a   : > { %603 = vperm.xlu0 %988, %v563_v6  }
  0x1e   : > { %622 = vperm.xlu0 %988, %v565_v7  }
  0x22   : > { %627 = vperm.xlu0 %988, %v566_v8  }
  0x26   : > { %991 = vset.pattern.permute.xlu0 %v1008_v27 }
  0x27   : > { %662 = vperm.xlu0 %991, %v633_v25  }
  0x2b   : > { %992 = vset.pattern.permute.xlu0 %v1007_v1 }
  0x2c   : > { %645 = vperm.xlu0 %992, %v632_v26  }
  0x30   : > { %650 = vperm.xlu0 %992, %v633_v25  }
  0x8d   : > { %v466_v9 = vpop.permute.xlu0 %465 }
  0x91   : > { %v471_v10 = vpop.permute.xlu0 %470 }
  0x95   : > { %v604_v45 = vpop.permute.xlu0 %603 }
  0x99   : > { %v623_v49 = vpop.permute.xlu0 %622 }
  0x9d   : > { %v628_v56 = vpop.permute.xlu0 %627 }
  0xa2   : > { %v663_v61 = vpop.permute.xlu0 %662 }
  0xa7   : > { %v646_v63 = vpop.permute.xlu0 %645 }
  0xd3   : > { %v952_v11 = vpop.f32.mrf.mxu0 }
  0xd4   : > { %v552_v13 = vadd.f32 %v952_v11, %v471_v10 }
  0xd5   : > { %v546_v14 = vpop.f32.mrf.mxu0 }
  0xd6   : > { %v560_v15 = vmul.f32 %v558_v12, %v552_v13  ;;  %v547_v16 = vadd.f32 %v546_v14, %v466_v9  ;;  %vm557_vm1 = vcmp.ge.f32.partialorder %v552_v13, 0.0 }
  0xd8   : > { %v559_v17 = vmul.f32 %v558_v12, %v547_v16  ;;  %vm556_vm2 = vcmp.ge.f32.partialorder %v547_v16, 0.0  ;;  %v562_v19 = vsel %vm557_vm1, %v552_v13, %v560_v15 }
  0xd9   : > { %v578_v22 = vmul.f32 %v562_v19, %v562_v19 }
  0xda   : > { %v561_v18 = vsel %vm556_vm2, %v547_v16, %v559_v17 }
  0xdb   : > { %v567_v20 = vadd.f32 %v562_v19, %v561_v18  ;;  %v577_v21 = vmul.f32 %v561_v18, %v561_v18 }
  0xdd   : > { %568 = vadd.xlane.f32.xlu1 %v567_v20  ;;  %v579_v23 = vadd.f32 %v578_v22, %v577_v21 }
  0xe1   : > { %580 = vadd.xlane.f32.xlu1 %v579_v23 }
  0xf2   : > { %608 = vperm.xlu1 %989, %v564_v24  }
  0xf6   : > { %990 = vset.pattern.permute.xlu1 %v1008_v27 }
  0xf7   : > { %658 = vperm.xlu1 %990, %v632_v26  }
  0xfb   : > { %993 = vset.pattern.permute.xlu1 %v1009_v28 }
  0xfc   : > { %677 = vperm.xlu1 %993, %v632_v26  }
 0x100   : > { %681 = vperm.xlu1 %993, %v633_v25  }
 0x104   : > { %994 = vset.pattern.permute.xlu1 %v1007_v1  ;;  %v651_v1 = vpop.permute.xlu0 %650 }
 0x166   : > { %v569_v29 = vpop.xlane.xlu1 %568 }
 0x167   : > { %v570_v30 = vrot.slane %v569_v29, 4 }
 0x169   : > { %v571_v31 = vadd.f32 %v570_v30, %v569_v29 }
 0x16a   : > { %v581_v32 = vpop.xlane.xlu1 %580 }
 0x16b   : > { %v572_v33 = vrot.slane %v571_v31, 2  ;;  %v582_v34 = vrot.slane %v581_v32, 4 }
 0x16d   : > { %v583_v35 = vadd.f32 %v582_v34, %v581_v32  ;;  %v573_v36 = vadd.f32 %v572_v33, %v571_v31 }
 0x16e   : > { %v609_v50 = vpop.permute.xlu1 %608 }
 0x16f   : > { %v584_v37 = vrot.slane %v583_v35, 2  ;;  %v574_v38 = vrot.slane %v573_v36, 1 }
 0x171   : > { %v575_v39 = vadd.f32 %v574_v38, %v573_v36  ;;  %v585_v40 = vadd.f32 %v584_v37, %v583_v35  ;;  %v710_v37 = vld [vmem:[%s1185_s9] sm:$0xff]  ;;  %v713_v38 = vld [vmem:[%s1186_s10 + $0x8] sm:$0xff] }
 0x172   : > { %v659_v62 = vpop.permute.xlu1 %658 }
 0x173   : > { %960 = vpush %v575_v39  ;;  %v586_v41 = vrot.slane %v585_v40, 1  ;;  %v711_v39 = vld [vmem:[%s1185_s9 + $0x8] sm:$0xff] }
 0x175   : > { %v587_v42 = vadd.f32 %v586_v41, %v585_v40  ;;  %v780_v40 = vld [vmem:[%s1188_s12] sm:$0xff] }
 0x176   : > { %v712_v41 = vld [vmem:[%s1186_s10] sm:$0xff] }
 0x177   : > { %962 = vpush %v587_v42  ;;  %v678_v0 = vpop.permute.xlu1 %677 }
 0x17b   : > { %v682_v3 = vpop.permute.xlu1 %681 }
 0x1a4   : > { %s961_s21 = spop %960 }
 0x1a5   : > { %s591_s22 = smul.f32 0.00048828125, %s961_s21  ;;  %s702_s21 = sld [smem:[#allocation3]] }
 0x1a7   : > { %s595_s23 = smul.f32 %s591_s22, %s591_s22  ;;  %v598_v46 = vstv %s591_s22 }
 0x1a8   : > { %s963_s24 = spop %962  ;;  %v599_v47 = vsub.f32 %v561_v18, %v598_v46  ;;  %v600_v48 = vsub.f32 %v562_v19, %v598_v46 }
 0x1a9   : > { %s594_s25 = smul.f32 0.00048828125, %s963_s24 }
 0x1aa   : > { %v612_v51 = vmul.f32 %v609_v50, %v600_v48  ;;  %v611_v52 = vmul.f32 %v604_v45, %v599_v47 }
 0x1ab   : > { %s596_s26 = ssub.f32 %s594_s25, %s595_s23  ;;  %v705_v24 = vstv %s702_s21 }
 0x1ad   : > { %s597_s28 = smax.f32 %s1010_s27, %s596_s26 }
 0x1ae   : > { %s613_s3 = sadd.f32 1e-08, %s597_s28 }
 0x1b0   : > { %v614_v43 = vstv %s613_s3 }
 0x1b1   : > { %995 = vrsqrt.f32 %v614_v43 }
 0x1be   : > { %v996_v44 = vpop.eup %995 }
 0x1bf   : > { %964 = vpush %v996_v44 }
 0x1f0   : > { %s965_s14 = spop %964 }
 0x1f1   : > { %v617_v53 = vstv %s965_s14  ;;  %s457_s14 = scalar_lea.vmem %s1189_s13, %s932_s8 }
 0x1f2   : > { %v618_v54 = vmul.f32 %v617_v53, %v611_v52  ;;  %v619_v55 = vmul.f32 %v617_v53, %v612_v51 }
 0x1f4   : > { %v630_v57 = vadd.f32 %v623_v49, %v618_v54  ;;  %v631_v58 = vadd.f32 %v628_v56, %v619_v55  ;;  %v1013_v56 = vmov 0.0  }
 0x1f5   : > { %953 = vmatprep.subr.mxu1 %v1013_v56  ;;  %957 = vmatprep.mubr.msk.f32.mxu1 %vm1014_vm7, %v1013_v56 }
 0x1f6   : > { %636 = vrot.lane.b32.xlu0 %v630_v57, %s1011_s15  ;;  %638 = vrot.lane.b32.xlu1 %v631_v58, %s1011_s15  ;;  %v666_v16 = vmul.f32 %v663_v61, %v631_v58  ;;  %v665_v17 = vmul.f32 %v659_v62, %v630_v57 }
 0x1fa   : > { %669 = vrot.lane.b32.xlu0 %v630_v57, %s1012_s16  ;;  %671 = vrot.lane.b32.xlu1 %v631_v58, %s1012_s16 }
 0x1fe   : > { %692 = vperm.xlu0 %992, %v688_v59   ;;  %697 = vperm.xlu1 %994, %v689_v60  }
 0x268   : > { %v637_v6 = vpop.permute.xlu0 %636  ;;  %v639_v7 = vpop.permute.xlu1 %638 }
 0x269   : > { %v641_v10 = vsel %vm640_vm3, %v637_v6, 0.0  ;;  %v642_v11 = vsel %vm640_vm3, %v639_v7, 0.0 }
 0x26a   : > { %v653_v14 = vmul.f32 %v646_v63, %v641_v10  ;;  %v654_v15 = vmul.f32 %v651_v1, %v642_v11  ;;  %v779_v10 = vld [vmem:[%s1187_s11] sm:$0xff] }
 0x26c   : > { %v670_v8 = vpop.permute.xlu0 %669  ;;  %v672_v9 = vpop.permute.xlu1 %671  ;;  %v667_v20 = vadd.f32 %v665_v17, %v653_v14  ;;  %v668_v21 = vadd.f32 %v666_v16, %v654_v15 }
 0x26d   : > { %v674_v12 = vsel %vm673_vm4, %v670_v8, 0.0  ;;  %v675_v13 = vsel %vm673_vm4, %v672_v9, 0.0 }
 0x26e   : > { %v684_v18 = vmul.f32 %v678_v0, %v674_v12  ;;  %v685_v19 = vmul.f32 %v682_v3, %v675_v13 }
 0x270   : > { %v686_v22 = vadd.f32 %v684_v18, %v667_v20  ;;  %v687_v23 = vadd.f32 %v685_v19, %v668_v21 }
 0x279   : > { %v693_v25 = vpop.permute.xlu0 %692  ;;  %v698_v26 = vpop.permute.xlu1 %697 }
 0x27a   : > { %v700_v27 = vadd.f32 %v693_v25, %v686_v22  ;;  %v701_v28 = vadd.f32 %v698_v26, %v687_v23 }
 0x27c   : > { %vm703_vm5 = vcmp.ge.f32.partialorder %v700_v27, 0.0  ;;  %v706_v29 = vmul.f32 %v705_v24, %v700_v27  ;;  %vm704_vm6 = vcmp.ge.f32.partialorder %v701_v28, 0.0  ;;  %v707_v30 = vmul.f32 %v705_v24, %v701_v28 }
 0x27e   : > { %v708_v31 = vsel %vm703_vm5, %v700_v27, %v706_v29  ;;  %v709_v32 = vsel %vm704_vm6, %v701_v28, %v707_v30 }
 0x27f   : > { %v714_v33 = vadd.f32 %v709_v32, %v708_v31  ;;  %v724_v34 = vmul.f32 %v708_v31, %v708_v31  ;;  %v725_v35 = vmul.f32 %v709_v32, %v709_v32 }
 0x281   : > { %715 = vadd.xlane.f32.xlu1 %v714_v33  ;;  %v726_v36 = vadd.f32 %v725_v35, %v724_v34 }
 0x283   : > { %727 = vadd.xlane.f32.xlu0 %v726_v36 }
 0x292   : > { %750 = vperm.xlu1 %994, %v710_v37  }
 0x296   : > { %774 = vperm.xlu1 %994, %v713_v38  }
 0x299   : > { %755 = vperm.xlu0 %992, %v711_v39  }
 0x29a   : > { %783 = vperm.xlu1 %994, %v780_v40  }
 0x29d   : > { %769 = vperm.xlu0 %992, %v712_v41  }
 0x30a   : > { %v716_v42 = vpop.xlane.xlu1 %715 }
 0x30b   : > { %v717_v43 = vrot.slane %v716_v42, 4 }
 0x30c   : > { %v728_v44 = vpop.xlane.xlu0 %727 }
 0x30d   : > { %v718_v45 = vadd.f32 %v717_v43, %v716_v42  ;;  %v729_v46 = vrot.slane %v728_v44, 4 }
 0x30e   : > { %v751_v62 = vpop.permute.xlu1 %750 }
 0x30f   : > { %v719_v47 = vrot.slane %v718_v45, 2  ;;  %v730_v48 = vadd.f32 %v729_v46, %v728_v44 }
 0x311   : > { %v731_v49 = vrot.slane %v730_v48, 2  ;;  %v720_v50 = vadd.f32 %v719_v47, %v718_v45 }
 0x312   : > { %v775_v6 = vpop.permute.xlu1 %774 }
 0x313   : > { %v721_v51 = vrot.slane %v720_v50, 1  ;;  %v732_v52 = vadd.f32 %v731_v49, %v730_v48 }
 0x314   : > { %v756_v63 = vpop.permute.xlu0 %755 }
 0x315   : > { %v722_v53 = vadd.f32 %v721_v51, %v720_v50  ;;  %v733_v54 = vrot.slane %v732_v52, 1 }
 0x316   : > { %v784_v11 = vpop.permute.xlu1 %783 }
 0x317   : > { %966 = vpush %v722_v53  ;;  %v734_v55 = vadd.f32 %v733_v54, %v732_v52 }
 0x318   : > { %v770_v8 = vpop.permute.xlu0 %769 }
 0x319   : > { %968 = vpush %v734_v55 }
 0x348   : > { %s967_s17 = spop %966 }
 0x349   : > { %s738_s18 = smul.f32 0.00048828125, %s967_s17 }
 0x34a   : > { %s969_s19 = spop %968 }
 0x34b   : > { %s742_s20 = smul.f32 %s738_s18, %s738_s18  ;;  %v745_v59 = vstv %s738_s18 }
 0x34c   : > { %s741_s21 = smul.f32 0.00048828125, %s969_s19  ;;  %v746_v60 = vsub.f32 %v708_v31, %v745_v59  ;;  %v747_v61 = vsub.f32 %v709_v32, %v745_v59 }
 0x34e   : > { %s743_s22 = ssub.f32 %s741_s21, %s742_s20  ;;  %v758_v0 = vmul.f32 %v751_v62, %v746_v60  ;;  %v759_v1 = vmul.f32 %v756_v63, %v747_v61 }
 0x350   : > { %s744_s23 = smax.f32 %s1010_s27, %s743_s22 }
 0x351   : > { %s760_s24 = sadd.f32 1e-08, %s744_s23 }
 0x353   : > { %v761_v57 = vstv %s760_s24 }
 0x354   : > { %997 = vrsqrt.f32 %v761_v57 }
 0x361   : > { %v998_v58 = vpop.eup %997 }
 0x362   : > { %970 = vpush %v998_v58 }
 0x393   : > { %s971_s25 = spop %970 }
 0x394   : > { %v764_v3 = vstv %s971_s25 }
 0x395   : > { %v765_v4 = vmul.f32 %v764_v3, %v758_v0  ;;  %v766_v5 = vmul.f32 %v764_v3, %v759_v1 }
 0x397   : > { %v778_v7 = vadd.f32 %v775_v6, %v766_v5  ;;  %v777_v9 = vadd.f32 %v770_v8, %v765_v4 }
 0x399   : > { %954 = vmatpush3.msra.mxu1 %v778_v7 }
 0x39a   : > { %955 = vmatprep.subr.mxu1 %v1013_v56 }
 0x39b   : > { %956 = vmatpush3.msra.mxu1 %v777_v9 }
 0x39c   : > { %958 = vmatmul.mubr.msk.f32.vlgmr.msra.gmra.mxu1 %vm786_vm8, %v779_v10 }
 0x45c   : > { %v856_v12 = vpop.f32.mrf.mxu1 }
 0x45d   : > { %v857_v13 = vadd.f32 %v856_v12, %v784_v11 }
 0x45e   : > { %v959_v14 = vpop.f32.mrf.mxu1 }
 0x45f   : > { %v860_v15 = vadd.f32 %v857_v13, %v1112_v2 }
 0x461   : > { %861 = vst [vmem:[%s457_s14] sm:$0xff] %v860_v15 }
 0x462 PF: > { %s25_s29 = sadd.s32 1, %s1005_s29  }
 0x463   : > { %p22_p4 = scmp.ge.s32.totalorder %s25_s29, 4  }
 0x465   :  { %24 = sbr.rel (!%p22_p4) target bundleno = 3 (0x3), region = 105 }

</bundles_post_ra>
